<compile_context>
chip_gen: v7x
topology: tpu7x:2x2x1
jax: 0.10.0
libtpu: 0.0.40
codegen_flags: <defaults>
</compile_context>

<pallas_src>
import functools

import jax
import jax.numpy as jnp
from jax import lax
from jax.experimental import pallas as pl
from jax.experimental.pallas import tpu as pltpu


def _round_up(v, m):
    return (v + m - 1) // m * m


def _largest_divisor(total, step, cap):
    """Largest multiple of `step` that divides `total` and is <= cap (falls back to `step`)."""
    best = step
    t = step
    while t <= min(total, cap):
        if total % t == 0:
            best = t
        t += step
    return best


def _vmem_limit(block_bytes):
    # Double-buffered pipeline blocks + in-kernel temporaries; 48 MiB cap is safe on v7x (64 MiB
    # physical per TC) and fine on v5e/v6e.
    return int(min(max(3 * block_bytes, 16 << 20), 48 << 20))


# ---------------------------------------------------------------------------
# Kernel 1: adder "conv" (negative L1) + residual add + per-sample BatchNorm
#           statistics (masked mean, centered M2) per channel.
#           One grid step == one batch sample; lane axis = flattened padded image.
# ---------------------------------------------------------------------------
def adder_bn_stats_kernel(x_ref, w_ref, m_ref, y_ref, mn_ref, m2_ref, *,
                          cin, taps, wp, pad, chunk, lout, inv_cnt, unroll):
    # x_ref : (Cp, Lin)        zero-padded image, flattened on lanes (Lin >= Lout + max shift)
    # w_ref : (Cin, Cp, ntaps) weights, per input channel a (Cout_p, 9) slab
    # m_ref : (1, Lout)        1.0 at valid output positions
    # y_ref : (Cp, Lout)       adder conv + residual
    # mn_ref, m2_ref : (Cp, 1) per-sample per-channel mean / centered M2
    cout_p = y_ref.shape[0]
    ntaps = len(taps)
    s_c = pad * wp + pad                       # centre-tap shift == residual alignment

    # Lane-chunked, output-stationary accumulation: acc (Cout_p, chunk) stays in vregs and is
    # stored to y exactly once per chunk.
    for c0 in range(0, lout, chunk):           # static, small trip count

        def ci_body(ci, acc):
            wci = w_ref[ci]                    # (Cout_p, ntaps), dynamic leading-dim index
            for t in range(ntaps):             # static 3x3 tap unroll (9 iterations)
                # shifted view of the flat padded image: x_pad[ci, f + a*Wp + b]
                xtap = x_ref[pl.ds(ci, 1), pl.ds(c0 + taps[t], chunk)]     # (1, chunk)
                # (1, chunk) sublane-bcast  vs  (Cout_p, 1) lane-bcast  -> (Cout_p, chunk) VPU
                acc = acc + jnp.abs(xtap - wci[:, t:t + 1])
            return acc

        acc = lax.fori_loop(0, cin, ci_body,
                            jnp.zeros((cout_p, chunk), jnp.float32),
                            unroll=unroll)

        resid = x_ref[:, pl.ds(c0 + s_c, chunk)]       # centre tap == un-padded x (Cp == Cout_p)
        y_ref[:, pl.ds(c0, chunk)] = resid - acc       # adder conv (negative L1) + residual

    # Per-sample, per-channel statistics with explicit centering (numerically stable); y is
    # still resident in VMEM (output block), so this re-read is cheap.
    y = y_ref[...]
    mask = m_ref[...]
    mean = jnp.sum(y * mask, axis=-1, keepdims=True) * inv_cnt             # (Cout_p, 1)
    d = (y - mean) * mask
    mn_ref[...] = mean
    m2_ref[...] = jnp.sum(d * d, axis=-1, keepdims=True)                   # (Cout_p, 1)


# ---------------------------------------------------------------------------
# Kernel 2: fused BatchNorm (precomputed per-row scale/shift) + PowerActivation,
#           re-blocked as a flat (N*Cout_p, Lout) memory-bound problem; in place over y.
# ---------------------------------------------------------------------------
def bn_act_kernel(y_ref, scale_ref, shift_ref, o_ref):
    z = y_ref[...] * scale_ref[...] + shift_ref[...]   # (R, Ltile)*(R, 1)+(R, 1)
    o_ref[...] = z * jnp.abs(z)                        # PowerActivation (sign * |z|^2)


# ---------------------------------------------------------------------------
# Wrapper: pad/flatten glue + two pallas_calls + tiny BN finalize in JAX.
# ---------------------------------------------------------------------------
def adder_layer_forward(x, w, gamma, beta, *, eps=1e-5):
    N, C, H, W = x.shape
    Cout, Cin, KH, KW = w.shape
    assert Cin == C and Cout == C, "residual + BatchNorm2d(in_channels) require C_out == C_in"
    assert KH == KW and KH % 2 == 1, "odd square kernel assumed (module uses kernel_size=3)"
    pad = KH // 2                                        # module: kernel=3, stride=1, padding=1

    Hp, Wp = H + 2 * pad, W + 2 * pad
    L = Hp * Wp
    Lout = _round_up(L, 128)                             # lane-dense output slab width
    ntaps = KH * KW
    s_max = (KH - 1) * Wp + (KW - 1)
    Lin = _round_up(Lout + s_max, 128)                   # room for every static tap shift
    Cp = _round_up(C, 8)                                 # fill sublanes (f32 tile is (8,128))

    # Zero-padded image flattened per sample onto the lane axis (pure reshape, no transpose),
    # channel- and lane-padded with zeros.
    xp = jnp.pad(x.astype(jnp.float32), ((0, 0), (0, 0), (pad, pad), (pad, pad)))
    x_flat = jnp.pad(xp.reshape(N, C, L), ((0, 0), (0, Cp - C), (0, Lin - L)))

    # Weights as (Cin, Cout_p, ntaps): in-kernel `w_ref[ci]` is a cheap leading-dim index.
    w_k = jnp.transpose(w.astype(jnp.float32).reshape(Cout, Cin, ntaps), (1, 0, 2))
    w_k = jnp.pad(w_k, ((0, 0), (0, Cp - Cout), (0, 0)))

    # Valid-output mask over flattened padded coordinates (output (i, j) lives at f = i*Wp + j).
    m2d = jnp.zeros((Hp, Wp), jnp.float32).at[:H, :W].set(1.0)
    mask = jnp.pad(m2d.reshape(1, L), ((0, 0), (0, Lout - L)))

    taps = tuple(a * Wp + b for a in range(KH) for b in range(KW))

    # Accumulator chunk: largest lane-multiple-of-128 divisor of Lout with Cp*chunk <= 32K f32
    # elements (~32 vregs) so the accumulator stays register-resident.
    chunk_cap = max(128, (32 * 1024 // Cp) // 128 * 128)
    chunk = _largest_divisor(Lout, 128, chunk_cap)

    # ---- kernel 1: adder conv + residual + per-sample BN stats (megacore-parallel) ----
    # TODO(synk): with N == 1 this grid has a single parallel step, leaving one v7x TC idle.
    blk1 = 4 * (Cp * Lin + Cin * Cp * ntaps + Lout + Cp * Lout + 2 * Cp)
    kernel1 = functools.partial(
        adder_bn_stats_kernel,
        cin=Cin, taps=taps, wp=Wp, pad=pad, chunk=chunk, lout=Lout,
        inv_cnt=1.0 / (H * W), unroll=min(4, max(1, Cin)))

    y, mean_n, m2_n = pl.pallas_call(
        kernel1,
        out_shape=(
            jax.ShapeDtypeStruct((N, Cp, Lout), jnp.float32),
            jax.ShapeDtypeStruct((N, Cp, 1), jnp.float32),
            jax.ShapeDtypeStruct((N, Cp, 1), jnp.float32),
        ),
        grid=(N,),
        in_specs=[
            pl.BlockSpec((None, Cp, Lin), lambda n: (n, 0, 0)),    # padded image per sample
            pl.BlockSpec((Cin, Cp, ntaps), lambda n: (0, 0, 0)),   # weights (resident)
            pl.BlockSpec((1, Lout), lambda n: (0, 0)),             # validity mask (resident)
        ],
        out_specs=(
            pl.BlockSpec((None, Cp, Lout), lambda n: (n, 0, 0)),   # y = conv + residual
            pl.BlockSpec((None, Cp, 1), lambda n: (n, 0, 0)),      # per-sample mean
            pl.BlockSpec((None, Cp, 1), lambda n: (n, 0, 0)),      # per-sample centered M2
        ),
        compiler_params=pltpu.CompilerParams(
            dimension_semantics=("parallel",),                     # no shared accumulator
            vmem_limit_bytes=_vmem_limit(blk1),
        ),
    )(x_flat, w_k, mask)

    # ---- BatchNorm finalize (tiny JAX glue): Chan parallel-variance combine ----
    cnt = H * W
    mean_n = mean_n[..., 0]                                        # (N, Cp)
    m2_n = m2_n[..., 0]                                            # (N, Cp)
    mean = jnp.mean(mean_n, axis=0)                                # equal counts per sample
    m2 = jnp.sum(m2_n, axis=0) + cnt * jnp.sum((mean_n - mean[None, :]) ** 2, axis=0)
    var = m2 / (N * cnt)                                           # biased variance (training)
    inv_std = lax.rsqrt(var + eps)
    gamma_p = jnp.pad(gamma.astype(jnp.float32), (0, Cp - Cout))   # padded channels -> scale 0
    beta_p = jnp.pad(beta.astype(jnp.float32), (0, Cp - Cout))
    scale_c = gamma_p * inv_std                                    # (Cp,)
    shift_c = beta_p - mean * scale_c                              # (Cp,)

    rows = N * Cp
    scale = jnp.broadcast_to(scale_c[None, :], (N, Cp)).reshape(rows, 1)
    shift = jnp.broadcast_to(shift_c[None, :], (N, Cp)).reshape(rows, 1)

    # ---- kernel 2: fused BN + PowerActivation over a flat (rows, Lout) slab, in place ----
    y2 = y.reshape(rows, Lout)                                     # free reshape (leading dims)
    tile_l = _largest_divisor(Lout, 128, 2048)
    row_cap = max(8, (2 << 20) // (4 * tile_l))
    tile_r = _largest_divisor(rows, 8, row_cap)
    if rows // tile_r == 1 and Lout // tile_l == 1 and Lout >= 256:
        tile_l = _largest_divisor(Lout, 128, Lout // 2)            # >=2 parallel steps (v7x TCs)
    grid2 = (rows // tile_r, Lout // tile_l)

    blk2 = 4 * (2 * tile_r * tile_l + 2 * tile_r)
    out2 = pl.pallas_call(
        bn_act_kernel,
        out_shape=jax.ShapeDtypeStruct((rows, Lout), jnp.float32),
        grid=grid2,
        in_specs=[
            pl.BlockSpec((tile_r, tile_l), lambda i, j: (i, j)),
            pl.BlockSpec((tile_r, 1), lambda i, j: (i, 0)),
            pl.BlockSpec((tile_r, 1), lambda i, j: (i, 0)),
        ],
        out_specs=pl.BlockSpec((tile_r, tile_l), lambda i, j: (i, j)),
        input_output_aliases={0: 0},                               # reuse y's HBM buffer
        compiler_params=pltpu.CompilerParams(
            dimension_semantics=("parallel", "parallel"),
            vmem_limit_bytes=_vmem_limit(blk2),
        ),
    )(y2, scale, shift)

    # Drop channel/lane padding and the image pad rows/cols, back to NCHW (single fused copy).
    out = out2.reshape(N, Cp, Lout)[:, :Cout, :L].reshape(N, Cout, Hp, Wp)
    return out[:, :, :H, :W]


# ---------------------------------------------------------------------------
# Pure-JAX reference (independent of the flattened/shifted path) for a correctness check.
# ---------------------------------------------------------------------------
def reference_forward(x, w, gamma, beta, *, eps=1e-5):
    N, C, H, W = x.shape
    Cout, Cin, KH, KW = w.shape
    pad = KH // 2
    xp = jnp.pad(x, ((0, 0), (0, 0), (pad, pad), (pad, pad)))
    acc = jnp.zeros((N, Cout, H, W), jnp.float32)
    for a in range(KH):
        for b in range(KW):
            xs = xp[:, :, a:a + H, b:b + W]                        # (N, Cin, H, W)
            wab = w[:, :, a, b][None, :, :, None, None]            # (1, Cout, Cin, 1, 1)
            acc = acc + jnp.sum(jnp.abs(xs[:, None] - wab), axis=2)
    y = -acc + x                                                   # adder conv + residual
    mean = jnp.mean(y, axis=(0, 2, 3), keepdims=True)
    var = jnp.mean((y - mean) ** 2, axis=(0, 2, 3), keepdims=True)
    z = (y - mean) / jnp.sqrt(var + eps) * gamma[None, :, None, None] + beta[None, :, None, None]
    return z * jnp.abs(z)


if __name__ == "__main__":
    key = jax.random.PRNGKey(0)
    k1, k2 = jax.random.split(key)

    N, C, H, W = 2, 4, 16, 16
    x = jax.random.normal(k1, (N, C, H, W), dtype=jnp.float32)
    w = jax.random.normal(k2, (C, C, 3, 3), dtype=jnp.float32) * 0.25
    gamma = jnp.ones((C,), jnp.float32)                            # BatchNorm2d default init
    beta = jnp.zeros((C,), jnp.float32)

    fwd = jax.jit(adder_layer_forward)
    out = jax.block_until_ready(fwd(x, w, gamma, beta))

    ref = reference_forward(x, w, gamma, beta)
    assert out.shape == (N, C, H, W)
    assert bool(jnp.allclose(out, ref, atol=2e-3, rtol=2e-3)), "Pallas output mismatch vs reference"

    print("KERNEL_OK")
</pallas_src>

<mosaic_0001>
module attributes {stable_mosaic.version = 11 : i64} {
  func.func @adder_bn_stats_kernel(%arg0: i32, %arg1: memref<1x8x512xf32, #tpu.memory_space<vmem>>, %arg2: memref<4x8x9xf32, #tpu.memory_space<vmem>>, %arg3: memref<1x384xf32, #tpu.memory_space<vmem>>, %arg4: memref<1x8x384xf32, #tpu.memory_space<vmem>>, %arg5: memref<1x8x1xf32, #tpu.memory_space<vmem>>, %arg6: memref<1x8x1xf32, #tpu.memory_space<vmem>>) attributes {dimension_semantics = [#tpu.dimension_semantics<parallel>], iteration_bounds = array<i64: 2>, scalar_prefetch = 0 : i64, scratch_operands = 0 : i64, tpu.core_type = #tpu.core_type<tc>, window_params = [{transform_indices = @transform_0, window_bounds = array<i64: 1, 8, 512>}, {pipeline_mode = #tpu.pipeline_mode<synchronous>, transform_indices = @transform_1, window_bounds = array<i64: 4, 8, 9>}, {pipeline_mode = #tpu.pipeline_mode<synchronous>, transform_indices = @transform_2, window_bounds = array<i64: 1, 384>}, {transform_indices = @transform_3, window_bounds = array<i64: 1, 8, 384>}, {transform_indices = @transform_4, window_bounds = array<i64: 1, 8, 1>}, {transform_indices = @transform_5, window_bounds = array<i64: 1, 8, 1>}]} {
    %cst = arith.constant 0.000000e+00 : f32
    %0 = vector.broadcast %cst : f32 to vector<8x384xf32>
    %c0_i32 = arith.constant 0 : i32
    %1 = arith.index_cast %c0_i32 : i32 to index
    %c0 = arith.constant 0 : index
    %c0_0 = arith.constant 0 : index
    %2 = vector.load %arg2[%1, %c0, %c0_0] : memref<4x8x9xf32, #tpu.memory_space<vmem>>, vector<1x8x9xf32>
    %3 = vector.shape_cast %2 : vector<1x8x9xf32> to vector<8x9xf32>
    %c0_1 = arith.constant 0 : index
    %4 = arith.index_cast %c0_i32 : i32 to index
    %c0_2 = arith.constant 0 : index
    %5 = vector.load %arg1[%c0_1, %4, %c0_2] : memref<1x8x512xf32, #tpu.memory_space<vmem>>, vector<1x1x384xf32>
    %6 = vector.shape_cast %5 : vector<1x1x384xf32> to vector<1x384xf32>
    %7 = vector.extract_strided_slice %3 {offsets = [0, 0], sizes = [8, 1], strides = [1, 1]} : vector<8x9xf32> to vector<8x1xf32>
    %8 = vector.broadcast %6 : vector<1x384xf32> to vector<8x384xf32>
    %9 = vector.broadcast %7 : vector<8x1xf32> to vector<8x384xf32>
    %10 = arith.subf %8, %9 : vector<8x384xf32>
    %11 = math.absf %10 : vector<8x384xf32>
    %12 = arith.addf %0, %11 : vector<8x384xf32>
    %c0_3 = arith.constant 0 : index
    %13 = arith.index_cast %c0_i32 : i32 to index
    %c1 = arith.constant 1 : index
    %14 = vector.load %arg1[%c0_3, %13, %c1] : memref<1x8x512xf32, #tpu.memory_space<vmem>>, vector<1x1x384xf32>
    %15 = vector.shape_cast %14 : vector<1x1x384xf32> to vector<1x384xf32>
    %16 = vector.extract_strided_slice %3 {offsets = [0, 1], sizes = [8, 1], strides = [1, 1]} : vector<8x9xf32> to vector<8x1xf32>
    %17 = vector.broadcast %15 : vector<1x384xf32> to vector<8x384xf32>
    %18 = vector.broadcast %16 : vector<8x1xf32> to vector<8x384xf32>
    %19 = arith.subf %17, %18 : vector<8x384xf32>
    %20 = math.absf %19 : vector<8x384xf32>
    %21 = arith.addf %12, %20 : vector<8x384xf32>
    %c0_4 = arith.constant 0 : index
    %22 = arith.index_cast %c0_i32 : i32 to index
    %c2 = arith.constant 2 : index
    %23 = vector.load %arg1[%c0_4, %22, %c2] : memref<1x8x512xf32, #tpu.memory_space<vmem>>, vector<1x1x384xf32>
    %24 = vector.shape_cast %23 : vector<1x1x384xf32> to vector<1x384xf32>
    %25 = vector.extract_strided_slice %3 {offsets = [0, 2], sizes = [8, 1], strides = [1, 1]} : vector<8x9xf32> to vector<8x1xf32>
    %26 = vector.broadcast %24 : vector<1x384xf32> to vector<8x384xf32>
    %27 = vector.broadcast %25 : vector<8x1xf32> to vector<8x384xf32>
    %28 = arith.subf %26, %27 : vector<8x384xf32>
    %29 = math.absf %28 : vector<8x384xf32>
    %30 = arith.addf %21, %29 : vector<8x384xf32>
    %c0_5 = arith.constant 0 : index
    %31 = arith.index_cast %c0_i32 : i32 to index
    %c18 = arith.constant 18 : index
    %32 = vector.load %arg1[%c0_5, %31, %c18] : memref<1x8x512xf32, #tpu.memory_space<vmem>>, vector<1x1x384xf32>
    %33 = vector.shape_cast %32 : vector<1x1x384xf32> to vector<1x384xf32>
    %34 = vector.extract_strided_slice %3 {offsets = [0, 3], sizes = [8, 1], strides = [1, 1]} : vector<8x9xf32> to vector<8x1xf32>
    %35 = vector.broadcast %33 : vector<1x384xf32> to vector<8x384xf32>
    %36 = vector.broadcast %34 : vector<8x1xf32> to vector<8x384xf32>
    %37 = arith.subf %35, %36 : vector<8x384xf32>
    %38 = math.absf %37 : vector<8x384xf32>
    %39 = arith.addf %30, %38 : vector<8x384xf32>
    %c0_6 = arith.constant 0 : index
    %40 = arith.index_cast %c0_i32 : i32 to index
    %c19 = arith.constant 19 : index
    %41 = vector.load %arg1[%c0_6, %40, %c19] : memref<1x8x512xf32, #tpu.memory_space<vmem>>, vector<1x1x384xf32>
    %42 = vector.shape_cast %41 : vector<1x1x384xf32> to vector<1x384xf32>
    %43 = vector.extract_strided_slice %3 {offsets = [0, 4], sizes = [8, 1], strides = [1, 1]} : vector<8x9xf32> to vector<8x1xf32>
    %44 = vector.broadcast %42 : vector<1x384xf32> to vector<8x384xf32>
    %45 = vector.broadcast %43 : vector<8x1xf32> to vector<8x384xf32>
    %46 = arith.subf %44, %45 : vector<8x384xf32>
    %47 = math.absf %46 : vector<8x384xf32>
    %48 = arith.addf %39, %47 : vector<8x384xf32>
    %c0_7 = arith.constant 0 : index
    %49 = arith.index_cast %c0_i32 : i32 to index
    %c20 = arith.constant 20 : index
    %50 = vector.load %arg1[%c0_7, %49, %c20] : memref<1x8x512xf32, #tpu.memory_space<vmem>>, vector<1x1x384xf32>
    %51 = vector.shape_cast %50 : vector<1x1x384xf32> to vector<1x384xf32>
    %52 = vector.extract_strided_slice %3 {offsets = [0, 5], sizes = [8, 1], strides = [1, 1]} : vector<8x9xf32> to vector<8x1xf32>
    %53 = vector.broadcast %51 : vector<1x384xf32> to vector<8x384xf32>
    %54 = vector.broadcast %52 : vector<8x1xf32> to vector<8x384xf32>
    %55 = arith.subf %53, %54 : vector<8x384xf32>
    %56 = math.absf %55 : vector<8x384xf32>
    %57 = arith.addf %48, %56 : vector<8x384xf32>
    %c0_8 = arith.constant 0 : index
    %58 = arith.index_cast %c0_i32 : i32 to index
    %c36 = arith.constant 36 : index
    %59 = vector.load %arg1[%c0_8, %58, %c36] : memref<1x8x512xf32, #tpu.memory_space<vmem>>, vector<1x1x384xf32>
    %60 = vector.shape_cast %59 : vector<1x1x384xf32> to vector<1x384xf32>
    %61 = vector.extract_strided_slice %3 {offsets = [0, 6], sizes = [8, 1], strides = [1, 1]} : vector<8x9xf32> to vector<8x1xf32>
    %62 = vector.broadcast %60 : vector<1x384xf32> to vector<8x384xf32>
    %63 = vector.broadcast %61 : vector<8x1xf32> to vector<8x384xf32>
    %64 = arith.subf %62, %63 : vector<8x384xf32>
    %65 = math.absf %64 : vector<8x384xf32>
    %66 = arith.addf %57, %65 : vector<8x384xf32>
    %c0_9 = arith.constant 0 : index
    %67 = arith.index_cast %c0_i32 : i32 to index
    %c37 = arith.constant 37 : index
    %68 = vector.load %arg1[%c0_9, %67, %c37] : memref<1x8x512xf32, #tpu.memory_space<vmem>>, vector<1x1x384xf32>
    %69 = vector.shape_cast %68 : vector<1x1x384xf32> to vector<1x384xf32>
    %70 = vector.extract_strided_slice %3 {offsets = [0, 7], sizes = [8, 1], strides = [1, 1]} : vector<8x9xf32> to vector<8x1xf32>
    %71 = vector.broadcast %69 : vector<1x384xf32> to vector<8x384xf32>
    %72 = vector.broadcast %70 : vector<8x1xf32> to vector<8x384xf32>
    %73 = arith.subf %71, %72 : vector<8x384xf32>
    %74 = math.absf %73 : vector<8x384xf32>
    %75 = arith.addf %66, %74 : vector<8x384xf32>
    %c0_10 = arith.constant 0 : index
    %76 = arith.index_cast %c0_i32 : i32 to index
    %c38 = arith.constant 38 : index
    %77 = vector.load %arg1[%c0_10, %76, %c38] : memref<1x8x512xf32, #tpu.memory_space<vmem>>, vector<1x1x384xf32>
    %78 = vector.shape_cast %77 : vector<1x1x384xf32> to vector<1x384xf32>
    %79 = vector.extract_strided_slice %3 {offsets = [0, 8], sizes = [8, 1], strides = [1, 1]} : vector<8x9xf32> to vector<8x1xf32>
    %80 = vector.broadcast %78 : vector<1x384xf32> to vector<8x384xf32>
    %81 = vector.broadcast %79 : vector<8x1xf32> to vector<8x384xf32>
    %82 = arith.subf %80, %81 : vector<8x384xf32>
    %83 = math.absf %82 : vector<8x384xf32>
    %84 = arith.addf %75, %83 : vector<8x384xf32>
    %c1_i32 = arith.constant 1 : i32
    %85 = arith.index_cast %c1_i32 : i32 to index
    %c0_11 = arith.constant 0 : index
    %c0_12 = arith.constant 0 : index
    %86 = vector.load %arg2[%85, %c0_11, %c0_12] : memref<4x8x9xf32, #tpu.memory_space<vmem>>, vector<1x8x9xf32>
    %87 = vector.shape_cast %86 : vector<1x8x9xf32> to vector<8x9xf32>
    %c0_13 = arith.constant 0 : index
    %88 = arith.index_cast %c1_i32 : i32 to index
    %c0_14 = arith.constant 0 : index
    %89 = vector.load %arg1[%c0_13, %88, %c0_14] : memref<1x8x512xf32, #tpu.memory_space<vmem>>, vector<1x1x384xf32>
    %90 = vector.shape_cast %89 : vector<1x1x384xf32> to vector<1x384xf32>
    %91 = vector.extract_strided_slice %87 {offsets = [0, 0], sizes = [8, 1], strides = [1, 1]} : vector<8x9xf32> to vector<8x1xf32>
    %92 = vector.broadcast %90 : vector<1x384xf32> to vector<8x384xf32>
    %93 = vector.broadcast %91 : vector<8x1xf32> to vector<8x384xf32>
    %94 = arith.subf %92, %93 : vector<8x384xf32>
    %95 = math.absf %94 : vector<8x384xf32>
    %96 = arith.addf %84, %95 : vector<8x384xf32>
    %c0_15 = arith.constant 0 : index
    %97 = arith.index_cast %c1_i32 : i32 to index
    %c1_16 = arith.constant 1 : index
    %98 = vector.load %arg1[%c0_15, %97, %c1_16] : memref<1x8x512xf32, #tpu.memory_space<vmem>>, vector<1x1x384xf32>
    %99 = vector.shape_cast %98 : vector<1x1x384xf32> to vector<1x384xf32>
    %100 = vector.extract_strided_slice %87 {offsets = [0, 1], sizes = [8, 1], strides = [1, 1]} : vector<8x9xf32> to vector<8x1xf32>
    %101 = vector.broadcast %99 : vector<1x384xf32> to vector<8x384xf32>
    %102 = vector.broadcast %100 : vector<8x1xf32> to vector<8x384xf32>
    %103 = arith.subf %101, %102 : vector<8x384xf32>
    %104 = math.absf %103 : vector<8x384xf32>
    %105 = arith.addf %96, %104 : vector<8x384xf32>
    %c0_17 = arith.constant 0 : index
    %106 = arith.index_cast %c1_i32 : i32 to index
    %c2_18 = arith.constant 2 : index
    %107 = vector.load %arg1[%c0_17, %106, %c2_18] : memref<1x8x512xf32, #tpu.memory_space<vmem>>, vector<1x1x384xf32>
    %108 = vector.shape_cast %107 : vector<1x1x384xf32> to vector<1x384xf32>
    %109 = vector.extract_strided_slice %87 {offsets = [0, 2], sizes = [8, 1], strides = [1, 1]} : vector<8x9xf32> to vector<8x1xf32>
    %110 = vector.broadcast %108 : vector<1x384xf32> to vector<8x384xf32>
    %111 = vector.broadcast %109 : vector<8x1xf32> to vector<8x384xf32>
    %112 = arith.subf %110, %111 : vector<8x384xf32>
    %113 = math.absf %112 : vector<8x384xf32>
    %114 = arith.addf %105, %113 : vector<8x384xf32>
    %c0_19 = arith.constant 0 : index
    %115 = arith.index_cast %c1_i32 : i32 to index
    %c18_20 = arith.constant 18 : index
    %116 = vector.load %arg1[%c0_19, %115, %c18_20] : memref<1x8x512xf32, #tpu.memory_space<vmem>>, vector<1x1x384xf32>
    %117 = vector.shape_cast %116 : vector<1x1x384xf32> to vector<1x384xf32>
    %118 = vector.extract_strided_slice %87 {offsets = [0, 3], sizes = [8, 1], strides = [1, 1]} : vector<8x9xf32> to vector<8x1xf32>
    %119 = vector.broadcast %117 : vector<1x384xf32> to vector<8x384xf32>
    %120 = vector.broadcast %118 : vector<8x1xf32> to vector<8x384xf32>
    %121 = arith.subf %119, %120 : vector<8x384xf32>
    %122 = math.absf %121 : vector<8x384xf32>
    %123 = arith.addf %114, %122 : vector<8x384xf32>
    %c0_21 = arith.constant 0 : index
    %124 = arith.index_cast %c1_i32 : i32 to index
    %c19_22 = arith.constant 19 : index
    %125 = vector.load %arg1[%c0_21, %124, %c19_22] : memref<1x8x512xf32, #tpu.memory_space<vmem>>, vector<1x1x384xf32>
    %126 = vector.shape_cast %125 : vector<1x1x384xf32> to vector<1x384xf32>
    %127 = vector.extract_strided_slice %87 {offsets = [0, 4], sizes = [8, 1], strides = [1, 1]} : vector<8x9xf32> to vector<8x1xf32>
    %128 = vector.broadcast %126 : vector<1x384xf32> to vector<8x384xf32>
    %129 = vector.broadcast %127 : vector<8x1xf32> to vector<8x384xf32>
    %130 = arith.subf %128, %129 : vector<8x384xf32>
    %131 = math.absf %130 : vector<8x384xf32>
    %132 = arith.addf %123, %131 : vector<8x384xf32>
    %c0_23 = arith.constant 0 : index
    %133 = arith.index_cast %c1_i32 : i32 to index
    %c20_24 = arith.constant 20 : index
    %134 = vector.load %arg1[%c0_23, %133, %c20_24] : memref<1x8x512xf32, #tpu.memory_space<vmem>>, vector<1x1x384xf32>
    %135 = vector.shape_cast %134 : vector<1x1x384xf32> to vector<1x384xf32>
    %136 = vector.extract_strided_slice %87 {offsets = [0, 5], sizes = [8, 1], strides = [1, 1]} : vector<8x9xf32> to vector<8x1xf32>
    %137 = vector.broadcast %135 : vector<1x384xf32> to vector<8x384xf32>
    %138 = vector.broadcast %136 : vector<8x1xf32> to vector<8x384xf32>
    %139 = arith.subf %137, %138 : vector<8x384xf32>
    %140 = math.absf %139 : vector<8x384xf32>
    %141 = arith.addf %132, %140 : vector<8x384xf32>
    %c0_25 = arith.constant 0 : index
    %142 = arith.index_cast %c1_i32 : i32 to index
    %c36_26 = arith.constant 36 : index
    %143 = vector.load %arg1[%c0_25, %142, %c36_26] : memref<1x8x512xf32, #tpu.memory_space<vmem>>, vector<1x1x384xf32>
    %144 = vector.shape_cast %143 : vector<1x1x384xf32> to vector<1x384xf32>
    %145 = vector.extract_strided_slice %87 {offsets = [0, 6], sizes = [8, 1], strides = [1, 1]} : vector<8x9xf32> to vector<8x1xf32>
    %146 = vector.broadcast %144 : vector<1x384xf32> to vector<8x384xf32>
    %147 = vector.broadcast %145 : vector<8x1xf32> to vector<8x384xf32>
    %148 = arith.subf %146, %147 : vector<8x384xf32>
    %149 = math.absf %148 : vector<8x384xf32>
    %150 = arith.addf %141, %149 : vector<8x384xf32>
    %c0_27 = arith.constant 0 : index
    %151 = arith.index_cast %c1_i32 : i32 to index
    %c37_28 = arith.constant 37 : index
    %152 = vector.load %arg1[%c0_27, %151, %c37_28] : memref<1x8x512xf32, #tpu.memory_space<vmem>>, vector<1x1x384xf32>
    %153 = vector.shape_cast %152 : vector<1x1x384xf32> to vector<1x384xf32>
    %154 = vector.extract_strided_slice %87 {offsets = [0, 7], sizes = [8, 1], strides = [1, 1]} : vector<8x9xf32> to vector<8x1xf32>
    %155 = vector.broadcast %153 : vector<1x384xf32> to vector<8x384xf32>
    %156 = vector.broadcast %154 : vector<8x1xf32> to vector<8x384xf32>
    %157 = arith.subf %155, %156 : vector<8x384xf32>
    %158 = math.absf %157 : vector<8x384xf32>
    %159 = arith.addf %150, %158 : vector<8x384xf32>
    %c0_29 = arith.constant 0 : index
    %160 = arith.index_cast %c1_i32 : i32 to index
    %c38_30 = arith.constant 38 : index
    %161 = vector.load %arg1[%c0_29, %160, %c38_30] : memref<1x8x512xf32, #tpu.memory_space<vmem>>, vector<1x1x384xf32>
    %162 = vector.shape_cast %161 : vector<1x1x384xf32> to vector<1x384xf32>
    %163 = vector.extract_strided_slice %87 {offsets = [0, 8], sizes = [8, 1], strides = [1, 1]} : vector<8x9xf32> to vector<8x1xf32>
    %164 = vector.broadcast %162 : vector<1x384xf32> to vector<8x384xf32>
    %165 = vector.broadcast %163 : vector<8x1xf32> to vector<8x384xf32>
    %166 = arith.subf %164, %165 : vector<8x384xf32>
    %167 = math.absf %166 : vector<8x384xf32>
    %168 = arith.addf %159, %167 : vector<8x384xf32>
    %c2_i32 = arith.constant 2 : i32
    %169 = arith.index_cast %c2_i32 : i32 to index
    %c0_31 = arith.constant 0 : index
    %c0_32 = arith.constant 0 : index
    %170 = vector.load %arg2[%169, %c0_31, %c0_32] : memref<4x8x9xf32, #tpu.memory_space<vmem>>, vector<1x8x9xf32>
    %171 = vector.shape_cast %170 : vector<1x8x9xf32> to vector<8x9xf32>
    %c0_33 = arith.constant 0 : index
    %172 = arith.index_cast %c2_i32 : i32 to index
    %c0_34 = arith.constant 0 : index
    %173 = vector.load %arg1[%c0_33, %172, %c0_34] : memref<1x8x512xf32, #tpu.memory_space<vmem>>, vector<1x1x384xf32>
    %174 = vector.shape_cast %173 : vector<1x1x384xf32> to vector<1x384xf32>
    %175 = vector.extract_strided_slice %171 {offsets = [0, 0], sizes = [8, 1], strides = [1, 1]} : vector<8x9xf32> to vector<8x1xf32>
    %176 = vector.broadcast %174 : vector<1x384xf32> to vector<8x384xf32>
    %177 = vector.broadcast %175 : vector<8x1xf32> to vector<8x384xf32>
    %178 = arith.subf %176, %177 : vector<8x384xf32>
    %179 = math.absf %178 : vector<8x384xf32>
    %180 = arith.addf %168, %179 : vector<8x384xf32>
    %c0_35 = arith.constant 0 : index
    %181 = arith.index_cast %c2_i32 : i32 to index
    %c1_36 = arith.constant 1 : index
    %182 = vector.load %arg1[%c0_35, %181, %c1_36] : memref<1x8x512xf32, #tpu.memory_space<vmem>>, vector<1x1x384xf32>
    %183 = vector.shape_cast %182 : vector<1x1x384xf32> to vector<1x384xf32>
    %184 = vector.extract_strided_slice %171 {offsets = [0, 1], sizes = [8, 1], strides = [1, 1]} : vector<8x9xf32> to vector<8x1xf32>
    %185 = vector.broadcast %183 : vector<1x384xf32> to vector<8x384xf32>
    %186 = vector.broadcast %184 : vector<8x1xf32> to vector<8x384xf32>
    %187 = arith.subf %185, %186 : vector<8x384xf32>
    %188 = math.absf %187 : vector<8x384xf32>
    %189 = arith.addf %180, %188 : vector<8x384xf32>
    %c0_37 = arith.constant 0 : index
    %190 = arith.index_cast %c2_i32 : i32 to index
    %c2_38 = arith.constant 2 : index
    %191 = vector.load %arg1[%c0_37, %190, %c2_38] : memref<1x8x512xf32, #tpu.memory_space<vmem>>, vector<1x1x384xf32>
    %192 = vector.shape_cast %191 : vector<1x1x384xf32> to vector<1x384xf32>
    %193 = vector.extract_strided_slice %171 {offsets = [0, 2], sizes = [8, 1], strides = [1, 1]} : vector<8x9xf32> to vector<8x1xf32>
    %194 = vector.broadcast %192 : vector<1x384xf32> to vector<8x384xf32>
    %195 = vector.broadcast %193 : vector<8x1xf32> to vector<8x384xf32>
    %196 = arith.subf %194, %195 : vector<8x384xf32>
    %197 = math.absf %196 : vector<8x384xf32>
    %198 = arith.addf %189, %197 : vector<8x384xf32>
    %c0_39 = arith.constant 0 : index
    %199 = arith.index_cast %c2_i32 : i32 to index
    %c18_40 = arith.constant 18 : index
    %200 = vector.load %arg1[%c0_39, %199, %c18_40] : memref<1x8x512xf32, #tpu.memory_space<vmem>>, vector<1x1x384xf32>
    %201 = vector.shape_cast %200 : vector<1x1x384xf32> to vector<1x384xf32>
    %202 = vector.extract_strided_slice %171 {offsets = [0, 3], sizes = [8, 1], strides = [1, 1]} : vector<8x9xf32> to vector<8x1xf32>
    %203 = vector.broadcast %201 : vector<1x384xf32> to vector<8x384xf32>
    %204 = vector.broadcast %202 : vector<8x1xf32> to vector<8x384xf32>
    %205 = arith.subf %203, %204 : vector<8x384xf32>
    %206 = math.absf %205 : vector<8x384xf32>
    %207 = arith.addf %198, %206 : vector<8x384xf32>
    %c0_41 = arith.constant 0 : index
    %208 = arith.index_cast %c2_i32 : i32 to index
    %c19_42 = arith.constant 19 : index
    %209 = vector.load %arg1[%c0_41, %208, %c19_42] : memref<1x8x512xf32, #tpu.memory_space<vmem>>, vector<1x1x384xf32>
    %210 = vector.shape_cast %209 : vector<1x1x384xf32> to vector<1x384xf32>
    %211 = vector.extract_strided_slice %171 {offsets = [0, 4], sizes = [8, 1], strides = [1, 1]} : vector<8x9xf32> to vector<8x1xf32>
    %212 = vector.broadcast %210 : vector<1x384xf32> to vector<8x384xf32>
    %213 = vector.broadcast %211 : vector<8x1xf32> to vector<8x384xf32>
    %214 = arith.subf %212, %213 : vector<8x384xf32>
    %215 = math.absf %214 : vector<8x384xf32>
    %216 = arith.addf %207, %215 : vector<8x384xf32>
    %c0_43 = arith.constant 0 : index
    %217 = arith.index_cast %c2_i32 : i32 to index
    %c20_44 = arith.constant 20 : index
    %218 = vector.load %arg1[%c0_43, %217, %c20_44] : memref<1x8x512xf32, #tpu.memory_space<vmem>>, vector<1x1x384xf32>
    %219 = vector.shape_cast %218 : vector<1x1x384xf32> to vector<1x384xf32>
    %220 = vector.extract_strided_slice %171 {offsets = [0, 5], sizes = [8, 1], strides = [1, 1]} : vector<8x9xf32> to vector<8x1xf32>
    %221 = vector.broadcast %219 : vector<1x384xf32> to vector<8x384xf32>
    %222 = vector.broadcast %220 : vector<8x1xf32> to vector<8x384xf32>
    %223 = arith.subf %221, %222 : vector<8x384xf32>
    %224 = math.absf %223 : vector<8x384xf32>
    %225 = arith.addf %216, %224 : vector<8x384xf32>
    %c0_45 = arith.constant 0 : index
    %226 = arith.index_cast %c2_i32 : i32 to index
    %c36_46 = arith.constant 36 : index
    %227 = vector.load %arg1[%c0_45, %226, %c36_46] : memref<1x8x512xf32, #tpu.memory_space<vmem>>, vector<1x1x384xf32>
    %228 = vector.shape_cast %227 : vector<1x1x384xf32> to vector<1x384xf32>
    %229 = vector.extract_strided_slice %171 {offsets = [0, 6], sizes = [8, 1], strides = [1, 1]} : vector<8x9xf32> to vector<8x1xf32>
    %230 = vector.broadcast %228 : vector<1x384xf32> to vector<8x384xf32>
    %231 = vector.broadcast %229 : vector<8x1xf32> to vector<8x384xf32>
    %232 = arith.subf %230, %231 : vector<8x384xf32>
    %233 = math.absf %232 : vector<8x384xf32>
    %234 = arith.addf %225, %233 : vector<8x384xf32>
    %c0_47 = arith.constant 0 : index
    %235 = arith.index_cast %c2_i32 : i32 to index
    %c37_48 = arith.constant 37 : index
    %236 = vector.load %arg1[%c0_47, %235, %c37_48] : memref<1x8x512xf32, #tpu.memory_space<vmem>>, vector<1x1x384xf32>
    %237 = vector.shape_cast %236 : vector<1x1x384xf32> to vector<1x384xf32>
    %238 = vector.extract_strided_slice %171 {offsets = [0, 7], sizes = [8, 1], strides = [1, 1]} : vector<8x9xf32> to vector<8x1xf32>
    %239 = vector.broadcast %237 : vector<1x384xf32> to vector<8x384xf32>
    %240 = vector.broadcast %238 : vector<8x1xf32> to vector<8x384xf32>
    %241 = arith.subf %239, %240 : vector<8x384xf32>
    %242 = math.absf %241 : vector<8x384xf32>
    %243 = arith.addf %234, %242 : vector<8x384xf32>
    %c0_49 = arith.constant 0 : index
    %244 = arith.index_cast %c2_i32 : i32 to index
    %c38_50 = arith.constant 38 : index
    %245 = vector.load %arg1[%c0_49, %244, %c38_50] : memref<1x8x512xf32, #tpu.memory_space<vmem>>, vector<1x1x384xf32>
    %246 = vector.shape_cast %245 : vector<1x1x384xf32> to vector<1x384xf32>
    %247 = vector.extract_strided_slice %171 {offsets = [0, 8], sizes = [8, 1], strides = [1, 1]} : vector<8x9xf32> to vector<8x1xf32>
    %248 = vector.broadcast %246 : vector<1x384xf32> to vector<8x384xf32>
    %249 = vector.broadcast %247 : vector<8x1xf32> to vector<8x384xf32>
    %250 = arith.subf %248, %249 : vector<8x384xf32>
    %251 = math.absf %250 : vector<8x384xf32>
    %252 = arith.addf %243, %251 : vector<8x384xf32>
    %c3_i32 = arith.constant 3 : i32
    %253 = arith.index_cast %c3_i32 : i32 to index
    %c0_51 = arith.constant 0 : index
    %c0_52 = arith.constant 0 : index
    %254 = vector.load %arg2[%253, %c0_51, %c0_52] : memref<4x8x9xf32, #tpu.memory_space<vmem>>, vector<1x8x9xf32>
    %255 = vector.shape_cast %254 : vector<1x8x9xf32> to vector<8x9xf32>
    %c0_53 = arith.constant 0 : index
    %256 = arith.index_cast %c3_i32 : i32 to index
    %c0_54 = arith.constant 0 : index
    %257 = vector.load %arg1[%c0_53, %256, %c0_54] : memref<1x8x512xf32, #tpu.memory_space<vmem>>, vector<1x1x384xf32>
    %258 = vector.shape_cast %257 : vector<1x1x384xf32> to vector<1x384xf32>
    %259 = vector.extract_strided_slice %255 {offsets = [0, 0], sizes = [8, 1], strides = [1, 1]} : vector<8x9xf32> to vector<8x1xf32>
    %260 = vector.broadcast %258 : vector<1x384xf32> to vector<8x384xf32>
    %261 = vector.broadcast %259 : vector<8x1xf32> to vector<8x384xf32>
    %262 = arith.subf %260, %261 : vector<8x384xf32>
    %263 = math.absf %262 : vector<8x384xf32>
    %264 = arith.addf %252, %263 : vector<8x384xf32>
    %c0_55 = arith.constant 0 : index
    %265 = arith.index_cast %c3_i32 : i32 to index
    %c1_56 = arith.constant 1 : index
    %266 = vector.load %arg1[%c0_55, %265, %c1_56] : memref<1x8x512xf32, #tpu.memory_space<vmem>>, vector<1x1x384xf32>
    %267 = vector.shape_cast %266 : vector<1x1x384xf32> to vector<1x384xf32>
    %268 = vector.extract_strided_slice %255 {offsets = [0, 1], sizes = [8, 1], strides = [1, 1]} : vector<8x9xf32> to vector<8x1xf32>
    %269 = vector.broadcast %267 : vector<1x384xf32> to vector<8x384xf32>
    %270 = vector.broadcast %268 : vector<8x1xf32> to vector<8x384xf32>
    %271 = arith.subf %269, %270 : vector<8x384xf32>
    %272 = math.absf %271 : vector<8x384xf32>
    %273 = arith.addf %264, %272 : vector<8x384xf32>
    %c0_57 = arith.constant 0 : index
    %274 = arith.index_cast %c3_i32 : i32 to index
    %c2_58 = arith.constant 2 : index
    %275 = vector.load %arg1[%c0_57, %274, %c2_58] : memref<1x8x512xf32, #tpu.memory_space<vmem>>, vector<1x1x384xf32>
    %276 = vector.shape_cast %275 : vector<1x1x384xf32> to vector<1x384xf32>
    %277 = vector.extract_strided_slice %255 {offsets = [0, 2], sizes = [8, 1], strides = [1, 1]} : vector<8x9xf32> to vector<8x1xf32>
    %278 = vector.broadcast %276 : vector<1x384xf32> to vector<8x384xf32>
    %279 = vector.broadcast %277 : vector<8x1xf32> to vector<8x384xf32>
    %280 = arith.subf %278, %279 : vector<8x384xf32>
    %281 = math.absf %280 : vector<8x384xf32>
    %282 = arith.addf %273, %281 : vector<8x384xf32>
    %c0_59 = arith.constant 0 : index
    %283 = arith.index_cast %c3_i32 : i32 to index
    %c18_60 = arith.constant 18 : index
    %284 = vector.load %arg1[%c0_59, %283, %c18_60] : memref<1x8x512xf32, #tpu.memory_space<vmem>>, vector<1x1x384xf32>
    %285 = vector.shape_cast %284 : vector<1x1x384xf32> to vector<1x384xf32>
    %286 = vector.extract_strided_slice %255 {offsets = [0, 3], sizes = [8, 1], strides = [1, 1]} : vector<8x9xf32> to vector<8x1xf32>
    %287 = vector.broadcast %285 : vector<1x384xf32> to vector<8x384xf32>
    %288 = vector.broadcast %286 : vector<8x1xf32> to vector<8x384xf32>
    %289 = arith.subf %287, %288 : vector<8x384xf32>
    %290 = math.absf %289 : vector<8x384xf32>
    %291 = arith.addf %282, %290 : vector<8x384xf32>
    %c0_61 = arith.constant 0 : index
    %292 = arith.index_cast %c3_i32 : i32 to index
    %c19_62 = arith.constant 19 : index
    %293 = vector.load %arg1[%c0_61, %292, %c19_62] : memref<1x8x512xf32, #tpu.memory_space<vmem>>, vector<1x1x384xf32>
    %294 = vector.shape_cast %293 : vector<1x1x384xf32> to vector<1x384xf32>
    %295 = vector.extract_strided_slice %255 {offsets = [0, 4], sizes = [8, 1], strides = [1, 1]} : vector<8x9xf32> to vector<8x1xf32>
    %296 = vector.broadcast %294 : vector<1x384xf32> to vector<8x384xf32>
    %297 = vector.broadcast %295 : vector<8x1xf32> to vector<8x384xf32>
    %298 = arith.subf %296, %297 : vector<8x384xf32>
    %299 = math.absf %298 : vector<8x384xf32>
    %300 = arith.addf %291, %299 : vector<8x384xf32>
    %c0_63 = arith.constant 0 : index
    %301 = arith.index_cast %c3_i32 : i32 to index
    %c20_64 = arith.constant 20 : index
    %302 = vector.load %arg1[%c0_63, %301, %c20_64] : memref<1x8x512xf32, #tpu.memory_space<vmem>>, vector<1x1x384xf32>
    %303 = vector.shape_cast %302 : vector<1x1x384xf32> to vector<1x384xf32>
    %304 = vector.extract_strided_slice %255 {offsets = [0, 5], sizes = [8, 1], strides = [1, 1]} : vector<8x9xf32> to vector<8x1xf32>
    %305 = vector.broadcast %303 : vector<1x384xf32> to vector<8x384xf32>
    %306 = vector.broadcast %304 : vector<8x1xf32> to vector<8x384xf32>
    %307 = arith.subf %305, %306 : vector<8x384xf32>
    %308 = math.absf %307 : vector<8x384xf32>
    %309 = arith.addf %300, %308 : vector<8x384xf32>
    %c0_65 = arith.constant 0 : index
    %310 = arith.index_cast %c3_i32 : i32 to index
    %c36_66 = arith.constant 36 : index
    %311 = vector.load %arg1[%c0_65, %310, %c36_66] : memref<1x8x512xf32, #tpu.memory_space<vmem>>, vector<1x1x384xf32>
    %312 = vector.shape_cast %311 : vector<1x1x384xf32> to vector<1x384xf32>
    %313 = vector.extract_strided_slice %255 {offsets = [0, 6], sizes = [8, 1], strides = [1, 1]} : vector<8x9xf32> to vector<8x1xf32>
    %314 = vector.broadcast %312 : vector<1x384xf32> to vector<8x384xf32>
    %315 = vector.broadcast %313 : vector<8x1xf32> to vector<8x384xf32>
    %316 = arith.subf %314, %315 : vector<8x384xf32>
    %317 = math.absf %316 : vector<8x384xf32>
    %318 = arith.addf %309, %317 : vector<8x384xf32>
    %c0_67 = arith.constant 0 : index
    %319 = arith.index_cast %c3_i32 : i32 to index
    %c37_68 = arith.constant 37 : index
    %320 = vector.load %arg1[%c0_67, %319, %c37_68] : memref<1x8x512xf32, #tpu.memory_space<vmem>>, vector<1x1x384xf32>
    %321 = vector.shape_cast %320 : vector<1x1x384xf32> to vector<1x384xf32>
    %322 = vector.extract_strided_slice %255 {offsets = [0, 7], sizes = [8, 1], strides = [1, 1]} : vector<8x9xf32> to vector<8x1xf32>
    %323 = vector.broadcast %321 : vector<1x384xf32> to vector<8x384xf32>
    %324 = vector.broadcast %322 : vector<8x1xf32> to vector<8x384xf32>
    %325 = arith.subf %323, %324 : vector<8x384xf32>
    %326 = math.absf %325 : vector<8x384xf32>
    %327 = arith.addf %318, %326 : vector<8x384xf32>
    %c0_69 = arith.constant 0 : index
    %328 = arith.index_cast %c3_i32 : i32 to index
    %c38_70 = arith.constant 38 : index
    %329 = vector.load %arg1[%c0_69, %328, %c38_70] : memref<1x8x512xf32, #tpu.memory_space<vmem>>, vector<1x1x384xf32>
    %330 = vector.shape_cast %329 : vector<1x1x384xf32> to vector<1x384xf32>
    %331 = vector.extract_strided_slice %255 {offsets = [0, 8], sizes = [8, 1], strides = [1, 1]} : vector<8x9xf32> to vector<8x1xf32>
    %332 = vector.broadcast %330 : vector<1x384xf32> to vector<8x384xf32>
    %333 = vector.broadcast %331 : vector<8x1xf32> to vector<8x384xf32>
    %334 = arith.subf %332, %333 : vector<8x384xf32>
    %335 = math.absf %334 : vector<8x384xf32>
    %336 = arith.addf %327, %335 : vector<8x384xf32>
    %c4_i32 = arith.constant 4 : i32
    %c0_71 = arith.constant 0 : index
    %c0_72 = arith.constant 0 : index
    %c19_73 = arith.constant 19 : index
    %337 = vector.load %arg1[%c0_71, %c0_72, %c19_73] : memref<1x8x512xf32, #tpu.memory_space<vmem>>, vector<1x8x384xf32>
    %338 = vector.shape_cast %337 : vector<1x8x384xf32> to vector<8x384xf32>
    %339 = arith.subf %338, %336 : vector<8x384xf32>
    %c0_74 = arith.constant 0 : index
    %c0_75 = arith.constant 0 : index
    %c0_76 = arith.constant 0 : index
    %340 = vector.load %arg4[%c0_74, %c0_75, %c0_76] : memref<1x8x384xf32, #tpu.memory_space<vmem>>, vector<1x8x384xf32>
    %341 = vector.shape_cast %340 : vector<1x8x384xf32> to vector<8x384xf32>
    %342 = vector.shape_cast %339 : vector<8x384xf32> to vector<1x8x384xf32>
    tpu.vector_store %arg4[%c0_74, %c0_75, %c0_76], %342 {strides = array<i32>} : memref<1x8x384xf32, #tpu.memory_space<vmem>>, vector<1x8x384xf32>,
    %c0_77 = arith.constant 0 : index
    %c0_78 = arith.constant 0 : index
    %c0_79 = arith.constant 0 : index
    %343 = vector.load %arg4[%c0_77, %c0_78, %c0_79] : memref<1x8x384xf32, #tpu.memory_space<vmem>>, vector<1x8x384xf32>
    %344 = vector.shape_cast %343 : vector<1x8x384xf32> to vector<8x384xf32>
    %c0_80 = arith.constant 0 : index
    %c0_81 = arith.constant 0 : index
    %345 = vector.load %arg3[%c0_80, %c0_81] : memref<1x384xf32, #tpu.memory_space<vmem>>, vector<1x384xf32>
    %346 = vector.broadcast %345 : vector<1x384xf32> to vector<8x384xf32>
    %347 = arith.mulf %344, %346 : vector<8x384xf32>
    %cst_82 = arith.constant dense<0.000000e+00> : vector<8xf32>
    %348 = vector.multi_reduction <add>, %347, %cst_82 [1] : vector<8x384xf32> to vector<8xf32>
    %349 = vector.shape_cast %348 : vector<8xf32> to vector<8x1xf32>
    %cst_83 = arith.constant 3.906250e-03 : f32
    %350 = vector.broadcast %cst_83 : f32 to vector<8x1xf32>
    %351 = arith.mulf %349, %350 : vector<8x1xf32>
    %352 = vector.broadcast %351 : vector<8x1xf32> to vector<8x384xf32>
    %353 = arith.subf %344, %352 : vector<8x384xf32>
    %354 = vector.broadcast %345 : vector<1x384xf32> to vector<8x384xf32>
    %355 = arith.mulf %353, %354 : vector<8x384xf32>
    %c0_84 = arith.constant 0 : index
    %c0_85 = arith.constant 0 : index
    %c0_86 = arith.constant 0 : index
    %356 = vector.load %arg5[%c0_84, %c0_85, %c0_86] : memref<1x8x1xf32, #tpu.memory_space<vmem>>, vector<1x8x1xf32>
    %357 = vector.shape_cast %356 : vector<1x8x1xf32> to vector<8x1xf32>
    %358 = vector.shape_cast %351 : vector<8x1xf32> to vector<1x8x1xf32>
    tpu.vector_store %arg5[%c0_84, %c0_85, %c0_86], %358 {strides = array<i32>} : memref<1x8x1xf32, #tpu.memory_space<vmem>>, vector<1x8x1xf32>,
    %359 = arith.mulf %355, %355 : vector<8x384xf32>
    %cst_87 = arith.constant dense<0.000000e+00> : vector<8xf32>
    %360 = vector.multi_reduction <add>, %359, %cst_87 [1] : vector<8x384xf32> to vector<8xf32>
    %361 = vector.shape_cast %360 : vector<8xf32> to vector<8x1xf32>
    %c0_88 = arith.constant 0 : index
    %c0_89 = arith.constant 0 : index
    %c0_90 = arith.constant 0 : index
    %362 = vector.load %arg6[%c0_88, %c0_89, %c0_90] : memref<1x8x1xf32, #tpu.memory_space<vmem>>, vector<1x8x1xf32>
    %363 = vector.shape_cast %362 : vector<1x8x1xf32> to vector<8x1xf32>
    %364 = vector.shape_cast %361 : vector<8x1xf32> to vector<1x8x1xf32>
    tpu.vector_store %arg6[%c0_88, %c0_89, %c0_90], %364 {strides = array<i32>} : memref<1x8x1xf32, #tpu.memory_space<vmem>>, vector<1x8x1xf32>,
    return
  }
  func.func @transform_0(%arg0: i32) -> (i32, i32, i32) {
    %c0_i32 = arith.constant 0 : i32
    %c0_i32_0 = arith.constant 0 : i32
    %c0_i32_1 = arith.constant 0 : i32
    return %arg0, %c0_i32, %c0_i32_0 : i32, i32, i32
  }
  func.func @transform_1(%arg0: i32) -> (i32, i32, i32) {
    %c0_i32 = arith.constant 0 : i32
    %c0_i32_0 = arith.constant 0 : i32
    %c0_i32_1 = arith.constant 0 : i32
    %c0_i32_2 = arith.constant 0 : i32
    return %c0_i32, %c0_i32_0, %c0_i32_1 : i32, i32, i32
  }
  func.func @transform_2(%arg0: i32) -> (i32, i32) {
    %c0_i32 = arith.constant 0 : i32
    %c0_i32_0 = arith.constant 0 : i32
    %c0_i32_1 = arith.constant 0 : i32
    return %c0_i32, %c0_i32_0 : i32, i32
  }
  func.func @transform_3(%arg0: i32) -> (i32, i32, i32) {
    %c0_i32 = arith.constant 0 : i32
    %c0_i32_0 = arith.constant 0 : i32
    %c0_i32_1 = arith.constant 0 : i32
    return %arg0, %c0_i32, %c0_i32_0 : i32, i32, i32
  }
  func.func @transform_4(%arg0: i32) -> (i32, i32, i32) {
    %c0_i32 = arith.constant 0 : i32
    %c0_i32_0 = arith.constant 0 : i32
    %c0_i32_1 = arith.constant 0 : i32
    return %arg0, %c0_i32, %c0_i32_0 : i32, i32, i32
  }
  func.func @transform_5(%arg0: i32) -> (i32, i32, i32) {
    %c0_i32 = arith.constant 0 : i32
    %c0_i32_0 = arith.constant 0 : i32
    %c0_i32_1 = arith.constant 0 : i32
    return %arg0, %c0_i32, %c0_i32_0 : i32, i32, i32
  }
}

module attributes {stable_mosaic.version = 11 : i64} {
  func.func @bn_act_kernel(%arg0: i32, %arg1: i32, %arg2: memref<16x128xf32, #tpu.memory_space<vmem>>, %arg3: memref<16x1xf32, #tpu.memory_space<vmem>>, %arg4: memref<16x1xf32, #tpu.memory_space<vmem>>, %arg5: memref<16x128xf32, #tpu.memory_space<vmem>>) attributes {dimension_semantics = [#tpu.dimension_semantics<parallel>, #tpu.dimension_semantics<parallel>], iteration_bounds = array<i64: 1, 3>, scalar_prefetch = 0 : i64, scratch_operands = 0 : i64, tpu.core_type = #tpu.core_type<tc>, window_params = [{transform_indices = @transform_0, window_bounds = array<i64: 16, 128>}, {transform_indices = @transform_1, window_bounds = array<i64: 16, 1>}, {transform_indices = @transform_2, window_bounds = array<i64: 16, 1>}, {transform_indices = @transform_3, window_bounds = array<i64: 16, 128>}]} {
    %c0 = arith.constant 0 : index
    %c0_0 = arith.constant 0 : index
    %0 = vector.load %arg2[%c0, %c0_0] : memref<16x128xf32, #tpu.memory_space<vmem>>, vector<16x128xf32>
    %c0_1 = arith.constant 0 : index
    %c0_2 = arith.constant 0 : index
    %1 = vector.load %arg3[%c0_1, %c0_2] : memref<16x1xf32, #tpu.memory_space<vmem>>, vector<16x1xf32>
    %2 = vector.broadcast %1 : vector<16x1xf32> to vector<16x128xf32>
    %3 = arith.mulf %0, %2 : vector<16x128xf32>
    %c0_3 = arith.constant 0 : index
    %c0_4 = arith.constant 0 : index
    %4 = vector.load %arg4[%c0_3, %c0_4] : memref<16x1xf32, #tpu.memory_space<vmem>>, vector<16x1xf32>
    %5 = vector.broadcast %4 : vector<16x1xf32> to vector<16x128xf32>
    %6 = arith.addf %3, %5 : vector<16x128xf32>
    %7 = math.absf %6 : vector<16x128xf32>
    %8 = arith.mulf %6, %7 : vector<16x128xf32>
    %c0_5 = arith.constant 0 : index
    %c0_6 = arith.constant 0 : index
    %9 = vector.load %arg5[%c0_5, %c0_6] : memref<16x128xf32, #tpu.memory_space<vmem>>, vector<16x128xf32>
    tpu.vector_store %arg5[%c0_5, %c0_6], %8 {strides = array<i32>} : memref<16x128xf32, #tpu.memory_space<vmem>>, vector<16x128xf32>,
    return
  }
  func.func @transform_0(%arg0: i32, %arg1: i32) -> (i32, i32) {
    %c0_i32 = arith.constant 0 : i32
    return %arg0, %arg1 : i32, i32
  }
  func.func @transform_1(%arg0: i32, %arg1: i32) -> (i32, i32) {
    %c0_i32 = arith.constant 0 : i32
    %c0_i32_0 = arith.constant 0 : i32
    return %arg0, %c0_i32 : i32, i32
  }
  func.func @transform_2(%arg0: i32, %arg1: i32) -> (i32, i32) {
    %c0_i32 = arith.constant 0 : i32
    %c0_i32_0 = arith.constant 0 : i32
    return %arg0, %c0_i32 : i32, i32
  }
  func.func @transform_3(%arg0: i32, %arg1: i32) -> (i32, i32) {
    %c0_i32 = arith.constant 0 : i32
    return %arg0, %arg1 : i32, i32
  }
}

</mosaic_0001>

<bundles_post_ra>
// kernel: adder_layer_forward.3
= control target key start
LH: loop header
LB: loop body
LE: loop exit
PB: predicated region body
PF: predicated region fallthrough
CT: control target
= control target key end

     0   :  { %s570_s12 = smov 0   ;;  %s572_s13 = smov 0   ;;  %s654_s0 = inlined_call_operand.vmem [shape: f32[16,384], index: 0, kind: input, shape index: {}, may-alias: {0,3}]   ;;  %s655_s1 = inlined_call_operand.vmem [shape: f32[16,1], index: 1, kind: input, shape index: {}]   ;;  %s656_s2 = inlined_call_operand.vmem [shape: f32[16,1], index: 2, kind: input, shape index: {}]   ;;  %s657_s3 = inlined_call_operand.vmem [shape: f32[16,384], index: 3, kind: output, shape index: {}, may-alias: {0,3}]  }
   0x1   :  { %s574_s14 = smov 0   ;;  %s576_s15 = smov 0  }
   0x2   :  { %s578_s16 = smov 0  }
   0x3 LB: > { %s22_s17 = sadd.s32 1, %s543_s15  ;;  %s451_s18 = sadd.s32 4294967295, %s547_s16   ;;  %s547_s16 = sphi %s578_s16, %s13_s16   ;;  %s543_s15 = sphi %s576_s15, %s662_s15   ;;  %s539_s14 = sphi %s574_s14, %s661_s14   ;;  %s535_s13 = sphi %s572_s13, %s660_s13   ;;  %s531_s12 = sphi %s570_s12, %s659_s12  }
   0x4   : > { %p23_p0 = scmp.ge.s32.totalorder %s22_s17, 3  ;;  %p41_p1 = scmp.ne.s32.totalorder %s535_s13, %s531_s12 }
   0x5   : > { %p42_p2 = scmp.eq.s32.totalorder %s547_s16, 0  ;;  %p125_p4 = scmp.eq.s32.totalorder %s451_s18, 2 }
   0x6   : > { %s664_s17 = smov (%p23_p0, %s22_s17), 0  ;;  %s34_s20 = sadd.s32 1, %s535_s13 }
   0x7   : > { %p43_p3 = por %p42_p2, %p41_p1  ;;  %s30_s19 = ssub.s32 %s543_s15, %s664_s17 }
   0x8   : > { %p32_p5 = scmp.eq.s32.totalorder %s30_s19, 0  ;;  %p605_p6 = por %p125_p4, %p41_p1 }
   0x9   : > { %p456_p7 = scmp.ge.s32.totalorder %s547_s16, 3 }
   0xa   : > { %s610_s22 = scalar_select %p32_p5, %s535_s13, %s34_s20  }
   0xb   : > { %165 = sbr.rel (%p456_p7) target bundleno = 25 (0x19), region = 24 }
  0x12   : > { %168 = sbr.rel (!%p43_p3) target bundleno = 25 (0x19), region = 28  ;;  %s170_s23 = sand.u32 (%p43_p3), 1, %s535_s13  }
  0x13   : > { %s458_s24 = sshll.u32 (%p43_p3), %s543_s15, 3  ;;  %s457_s25 = sshll.u32 (%p43_p3), %s170_s23, 4 }
  0x14   : > { %s177_s28 = scalar_lea.vmem (%p43_p3), %s654_s0, %s458_s24  ;;  %s172_s29 = scalar_lea.vmem (%p43_p3), [#allocation2], %s457_s25 }
  0x15   : > { %v207_v0 = vld [vmem:[%s177_s28] sm:$0xff] (%p43_p3)  ;;  %v209_v1 = vld [vmem:[%s177_s28 + $0x18] sm:$0xff] (%p43_p3) }
  0x16   : > { %208 = vst [vmem:[%s172_s29] sm:$0xff] (%p43_p3), %v207_v0  ;;  %210 = vst [vmem:[%s172_s29 + $0x8] sm:$0xff] (%p43_p3), %v209_v1 }
  0x19 PF: > { %p459_p8 = scmp.ge.s32.totalorder %s547_s16, 1  ;;  %p215_p9 = scmp.lt.s32.totalorder %s547_s16, 4 }
  0x1b   : > { %p216_p10 = pnand %p459_p8, %p215_p9 }
  0x1c   : > { %v284_v2 = vld [vmem:[%s656_s2] sm:$0xff] (!%p216_p10)  ;;  %v549_v4 = vmov (!%p216_p10), 0   ;;  %v285_v5 = vld [vmem:[%s656_s2 + $0x8] sm:$0xff] (!%p216_p10)  ;;  %s222_s11 = sand.u32 (!%p216_p10), 1, %s531_s12  }
  0x1d   : > { %219 = sbr.rel (%p216_p10) target bundleno = 179 (0xb3), region = 66  ;;  %v270_v3 = vld [vmem:[%s655_s1] sm:$0xff] (!%p216_p10)  ;;  %508 = vset.pattern.permute.xlu1 (!%p216_p10), %v549_v4  ;;  %507 = vset.pattern.permute.xlu0 (!%p216_p10), %v549_v4  ;;  %v271_v6 = vld [vmem:[%s655_s1 + $0x8] sm:$0xff] (!%p216_p10)  ;;  %s460_s18 = sshll.u32 (!%p216_p10), %s222_s11, 4 }
  0x1e   : > { %288 = vperm.xlu1 (!%p216_p10), %508, %v284_v2   ;;  %274 = vperm.xlu0 (!%p216_p10), %507, %v270_v3   ;;  %s224_s19 = scalar_lea.vmem (!%p216_p10), [#allocation2], %s460_s18  ;;  %s253_s20 = scalar_lea.vmem (!%p216_p10), [#allocation3], %s460_s18 }
  0x1f   : > { %v268_v7 = vld [vmem:[%s224_s19] sm:$0xff] (!%p216_p10)  ;;  %v269_v11 = vld [vmem:[%s224_s19 + $0x8] sm:$0xff] (!%p216_p10) }
  0x22   : > { %293 = vperm.xlu1 (!%p216_p10), %508, %v285_v5   ;;  %279 = vperm.xlu0 (!%p216_p10), %507, %v271_v6  }
  0x24   : > { %s463_s12 = sshll.u32 (%p605_p6), %s539_s14, 3 }
  0x25   : > { %s315_s25 = scalar_lea.vmem (%p605_p6), %s657_s3, %s463_s12 }
  0x9d   : > { %v289_v8 = vpop.permute.xlu1 %288  ;;  %v275_v9 = vpop.permute.xlu0 %274 }
  0x9e   : > { %v282_v10 = vmul.f32 %v275_v9, %v268_v7 }
  0xa0   : > { %v296_v12 = vadd.f32 %v289_v8, %v282_v10 }
  0xa1   : > { %v280_v13 = vpop.permute.xlu0 %279  ;;  %v294_v16 = vpop.permute.xlu1 %293 }
  0xa2   : > { %v298_v14 = vand.u32 2147483647, %v296_v12  ;;  %v283_v15 = vmul.f32 %v280_v13, %v269_v11 }
  0xa4   : > { %v300_v17 = vmul.f32 %v298_v14, %v296_v12  ;;  %v297_v18 = vadd.f32 %v294_v16, %v283_v15  ;;  %310 = sbr.rel (!%p605_p6) target bundleno = 179 (0xb3), region = 74 }
  0xa6   : > { %302 = vst [vmem:[%s253_s20] sm:$0xff] %v300_v17  ;;  %v299_v19 = vand.u32 2147483647, %v297_v18 }
  0xa8   : > { %v301_v20 = vmul.f32 %v299_v19, %v297_v18 }
  0xaa   : > { %303 = vst [vmem:[%s253_s20 + $0x8] sm:$0xff] %v301_v20 }
  0xad   : > { %v345_v21 = vld [vmem:[%s253_s20] sm:$0xff] }
  0xae   : > { %346 = vst [vmem:[%s315_s25] sm:$0xff] %v345_v21 }
  0xb1   : > { %v347_v22 = vld [vmem:[%s253_s20 + $0x8] sm:$0xff] }
  0xb2   : > { %348 = vst [vmem:[%s315_s25 + $0x18] sm:$0xff] %v347_v22 }
  0xb3 PF: > { %s13_s16 = sadd.s32 1, %s547_s16   ;;  %s659_s12 = smov %s535_s13 }
  0xb4   : > { %p10_p11 = scmp.ge.s32.totalorder %s13_s16, 5   ;;  %s660_s13 = smov %s610_s22 }
  0xb5   : > { %s661_s14 = smov %s543_s15  ;;  %s662_s15 = smov %s664_s17 }
  0xb6   :  { %12 = sbr.rel (!%p10_p11) target bundleno = 3 (0x3), region = 149 }

// kernel: adder_layer_forward.2
= control target key start
LH: loop header
LB: loop body
LE: loop exit
PB: predicated region body
PF: predicated region fallthrough
CT: control target
= control target key end

     0   :  { %s1878_s18 = smov 0   ;;  %s2742_s0 = inlined_call_operand.vmem [shape: f32[2,8,512], index: 0, kind: input, shape index: {}]   ;;  %s2743_s1 = inlined_call_operand.vmem [shape: f32[4,8,9], index: 1, kind: input, shape index: {}]   ;;  %s2744_s2 = inlined_call_operand.vmem [shape: f32[1,384], index: 2, kind: input, shape index: {}]   ;;  %s2745_s3 = inlined_call_operand.vmem [shape: f32[2,8,384], index: 3, kind: output, shape index: {0}]   ;;  %s2746_s4 = inlined_call_operand.vmem [shape: f32[2,8,1], index: 4, kind: output, shape index: {1}]   ;;  %s2747_s5 = inlined_call_operand.vmem [shape: f32[2,8,1], index: 5, kind: output, shape index: {2}]  }
   0x1 LB: > { %s1741_s19 = sadd.s32 4294967295, %s1828_s18   ;;  %p1745_p0 = scmp.ge.s32.totalorder %s1828_s18, 1  ;;  %s1828_s18 = sphi %s1878_s18, %s16_s18  }
   0x2   : > { %p192_p1 = scmp.lt.s32.totalorder %s1828_s18, 3 }
   0x4   : > { %p193_p2 = pnand %p1745_p0, %p192_p1 }
   0x6   : > { %196 = sbr.rel (%p193_p2) target bundleno = 1091 (0x443), region = 32 }
   0xd   : > { %v1889_v0 = vld [vmem:[%s2743_s1] sm:$0xff]  ;;  %v1830_v1 = vmov 6   ;;  %v1831_v2 = vmov 3   ;;  %v1832_v3 = vmov 1   ;;  %v1833_v4 = vmov 4   ;;  %v1751_v5 = vld [vmem:[%s2743_s1 + $0x8] sm:$0xff] }
   0xe   : > { %1793 = vset.pattern.permute.xlu0 %v1830_v1  ;;  %1790 = vset.pattern.permute.xlu1 %v1831_v2  ;;  %v1834_v6 = vmov 5   ;;  %v1835_v7 = vmov 7   ;;  %v1836_v8 = vmov 8   ;;  %v1837_v9 = vmov 2   ;;  %v1907_v10 = vld [vmem:[%s2743_s1 + $0x10] sm:$0xff]  ;;  %v1913_v11 = vld [vmem:[%s2743_s1 + $0x18] sm:$0xff] }
   0xf   : > { %471 = vperm.xlu0 %1793, %v1889_v0   ;;  %369 = vperm.xlu1 %1790, %v1889_v0   ;;  %v1838_v12 = vmov 0   ;;  %p228_p3 = scmp.lt.s32.totalorder %s1741_s19, 1  ;;  %v249_v13 = vlaneseq  ;;  %s1839_s7 = smov 127   ;;  %vm324_vm0 = vcmask 1039360   ;;  %vm358_vm1 = vcmask 1031168  }
  0x10   : > { %s1840_s8 = smov 126   ;;  %s1841_s9 = smov 110   ;;  %vm392_vm2 = vcmask 900096   ;;  %vm426_vm3 = vcmask 891904   ;;  %vm460_vm4 = vcmask 883712   ;;  %vm494_vm5 = vcmask 752640  }
  0x11   : > { %s2780_s19 = smov (!%p228_p3, %s1741_s19), 1  ;;  %v250_v14 = vshrl.u32 %v249_v13, 7  ;;  %s1842_s10 = smov 109   ;;  %vm528_vm6 = vcmask 744448   ;;  %vm562_vm7 = vcmask 736256   ;;  %vm1548_vm8 = vcmask 154624  }
  0x12   : > { %s1762_s28 = sshll.u32 %s2780_s19, 5  ;;  %s1843_s11 = smov 108   ;;  %vm1614_vm9 = vcmask 7168  }
  0x13   : > { %1794 = vset.pattern.permute.xlu0 %v1832_v3  ;;  %1791 = vset.pattern.permute.xlu1 %v1833_v4  ;;  %s1946_s6 = scalar_lea.vmem %s2742_s0, %s1762_s28  ;;  %v1950_v16 = vsub.s32 2, %v250_v14  ;;  %v1952_v17 = vsub.s32 0, %v250_v14  ;;  %v1955_v19 = vsub.s32 1, %v250_v14  ;;  %v1968_v27 = vsub.s32 3, %v250_v14  ;;  %s1844_s12 = smov 92  }
  0x14   : > { %301 = vperm.xlu0 %1794, %v1889_v0   ;;  %403 = vperm.xlu1 %1791, %v1889_v0   ;;  %v278_v18 = vld [vmem:[%s1946_s6] ss:$8 sm:$0xf]  ;;  %s1845_s13 = smov 91   ;;  %s1846_s14 = smov 90  }
  0x15   : > { %2758 = vst [vmem:[#allocation2_spill] sm:$0xff] %v1952_v17  ;;  %2759 = vst [vmem:[#allocation3_spill] sm:$0xff] %v1955_v19  ;;  %v1958_v20 = vrot.slane %v278_v18, %v1950_v16  ;;  %v1961_v21 = vrot.slane %v278_v18, %v1952_v17  ;;  %v1966_v26 = vrot.slane %v278_v18, %v1955_v19  ;;  %s1847_s15 = smov 19   ;;  %s1763_s16 = smul.u32 24, %s2780_s19 }
  0x16   : > { %v1976_v33 = vrot.slane %v278_v18, %v1968_v27  ;;  %s1749_s24 = sshll.u32 %s2780_s19, 3 }
  0x17   : > { %s237_s21 = scalar_lea.vmem %s2745_s3, %s1763_s16  ;;  %s241_s27 = scalar_lea.vmem %s2746_s4, %s1749_s24 }
  0x18   : > { %630 = vperm.xlu0 %1794, %v1751_v5   ;;  %1792 = vset.pattern.permute.xlu1 %v1834_v6  ;;  %s245_s29 = scalar_lea.vmem %s2747_s5, %s1749_s24 }
  0x19   : > { %437 = vperm.xlu1 %1792, %v1889_v0  }
  0x1c   : > { %1799 = vset.pattern.permute.xlu0 %v1833_v4 }
  0x1d   : > { %729 = vperm.xlu0 %1799, %v1751_v5   ;;  %1795 = vset.pattern.permute.xlu1 %v1835_v7 }
  0x1e   : > { %505 = vperm.xlu1 %1795, %v1889_v0  }
  0x21   : > { %1802 = vset.pattern.permute.xlu0 %v1835_v7 }
  0x22   : > { %828 = vperm.xlu0 %1802, %v1751_v5   ;;  %1796 = vset.pattern.permute.xlu1 %v1836_v8 }
  0x23   : > { %539 = vperm.xlu1 %1796, %v1889_v0  }
  0x26   : > { %1803 = vset.pattern.permute.xlu0 %v1837_v9 }
  0x27   : > { %335 = vperm.xlu0 %1803, %v1889_v0   ;;  %1797 = vset.pattern.permute.xlu1 %v1837_v9 }
  0x28   : > { %663 = vperm.xlu1 %1797, %v1751_v5  }
  0x2b   : > { %984 = vperm.xlu0 %1803, %v1907_v10  }
  0x2c   : > { %1798 = vset.pattern.permute.xlu1 %v1831_v2 }
  0x2d   : > { %696 = vperm.xlu1 %1798, %v1751_v5  }
  0x2f   : > { %1812 = vset.pattern.permute.xlu0 %v1831_v2 }
  0x30   : > { %1338 = vperm.xlu0 %1812, %v1913_v11  }
  0x31   : > { %1800 = vset.pattern.permute.xlu1 %v1834_v6 }
  0x32   : > { %762 = vperm.xlu1 %1800, %v1751_v5  }
  0x34   : > { %1813 = vset.pattern.permute.xlu0 %v1834_v6 }
  0x35   : > { %1083 = vperm.xlu0 %1813, %v1907_v10  }
  0x36   : > { %1801 = vset.pattern.permute.xlu1 %v1830_v1 }
  0x37   : > { %795 = vperm.xlu1 %1801, %v1751_v5  }
  0x39   : > { %1404 = vperm.xlu0 %1813, %v1913_v11  }
  0x3b   : > { %1804 = vset.pattern.permute.xlu1 %v1836_v8 }
  0x3c   : > { %861 = vperm.xlu1 %1804, %v1751_v5  }
  0x3d   : > { %1816 = vset.pattern.permute.xlu0 %v1836_v8 }
  0x3e   : > { %1182 = vperm.xlu0 %1816, %v1907_v10  }
  0x40   : > { %1805 = vset.pattern.permute.xlu1 %v1832_v3 }
  0x41   : > { %951 = vperm.xlu1 %1805, %v1907_v10  }
  0x42   : > { %1503 = vperm.xlu0 %1816, %v1913_v11  }
  0x45   : > { %1806 = vset.pattern.permute.xlu1 %v1831_v2 }
  0x46   : > { %1819 = vset.pattern.permute.xlu0 %v1838_v12  ;;  %1017 = vperm.xlu1 %1806, %v1907_v10  }
  0x47   : > { %594 = vperm.xlu0 %1819, %v1751_v5  }
  0x4a   : > { %1807 = vset.pattern.permute.xlu1 %v1833_v4 }
  0x4b   : > { %1050 = vperm.xlu1 %1807, %v1907_v10  }
  0x4f   : > { %1808 = vset.pattern.permute.xlu1 %v1830_v1 }
  0x50   : > { %1116 = vperm.xlu1 %1808, %v1907_v10  }
  0x54   : > { %1809 = vset.pattern.permute.xlu1 %v1835_v7 }
  0x55   : > { %1149 = vperm.xlu1 %1809, %v1907_v10  }
  0x59   : > { %1810 = vset.pattern.permute.xlu1 %v1832_v3 }
  0x5a   : > { %1272 = vperm.xlu1 %1810, %v1913_v11  }
  0x5e   : > { %1811 = vset.pattern.permute.xlu1 %v1837_v9 }
  0x5f   : > { %1305 = vperm.xlu1 %1811, %v1913_v11  }
  0x63   : > { %1814 = vset.pattern.permute.xlu1 %v1838_v12 }
  0x64   : > { %266 = vperm.xlu1 %1814, %v1889_v0  }
  0x68   : > { %1815 = vset.pattern.permute.xlu1 %v1833_v4 }
  0x69   : > { %1371 = vperm.xlu1 %1815, %v1913_v11  }
  0x6d   : > { %1817 = vset.pattern.permute.xlu1 %v1830_v1 }
  0x6e   : > { %1437 = vperm.xlu1 %1817, %v1913_v11  }
  0x72   : > { %1818 = vset.pattern.permute.xlu1 %v1835_v7 }
  0x73   : > { %1470 = vperm.xlu1 %1818, %v1913_v11  }
  0x77   : > { %1820 = vset.pattern.permute.xlu1 %v1838_v12 }
  0x8e   : > { %v1948_v15 = vpop.permute.xlu0 %471  ;;  %v370_v23 = vpop.permute.xlu1 %369 }
  0x8f   : > { %v372_v49 = vsub.f32 %v1961_v21, %v370_v23  ;;  %v373_v50 = vsub.f32 %v1966_v26, %v370_v23  ;;  %v374_v56 = vsub.f32 %v1958_v20, %v370_v23  ;;  %v375_v57 = vsub.f32 %v1976_v33, %v370_v23 }
  0x90   : > { %v474_v14 = vsub.f32 %v1961_v21, %v1948_v15 }
  0x91   : > { %v376_v54 = vand.u32 2147483647, %v372_v49  ;;  %v377_v55 = vand.u32 2147483647, %v373_v50  ;;  %v378_v61 = vand.u32 2147483647, %v374_v56 }
  0x92   : > { %v379_v62 = vand.u32 2147483647, %v375_v57 }
  0x93   : > { %v302_v22 = vpop.permute.xlu0 %301  ;;  %v404_v32 = vpop.permute.xlu1 %403 }
  0x94   : > { %v306_v24 = vsub.f32 %v1958_v20, %v302_v22  ;;  %v304_v25 = vsub.f32 %v1961_v21, %v302_v22  ;;  %v305_v30 = vsub.f32 %v1966_v26, %v302_v22  ;;  %v307_v35 = vsub.f32 %v1976_v33, %v302_v22 }
  0x95   : > { %v406_v58 = vsub.f32 %v1961_v21, %v404_v32  ;;  %v407_v59 = vsub.f32 %v1966_v26, %v404_v32  ;;  %v408_v1 = vsub.f32 %v1958_v20, %v404_v32  ;;  %v409_v2 = vsub.f32 %v1976_v33, %v404_v32 }
  0x96   : > { %v310_v28 = vand.u32 2147483647, %v306_v24  ;;  %v308_v29 = vand.u32 2147483647, %v304_v25  ;;  %v309_v34 = vand.u32 2147483647, %v305_v30  ;;  %v476_v24 = vsub.f32 %v1958_v20, %v1948_v15 }
  0x97   : > { %v1971_v31 = vpop.permute.xlu0 %630  ;;  %v311_v38 = vand.u32 2147483647, %v307_v35  ;;  %v410_v63 = vand.u32 2147483647, %v406_v58  ;;  %v411_v0 = vand.u32 2147483647, %v407_v59 }
  0x98   : > { %320 = vrot.lane.b32.xlu0 %v310_v28, %s1839_s7  ;;  %316 = vrot.lane.b32.xlu1 %v308_v29, %s1839_s7  ;;  %v1979_v36 = vpop.permute.xlu1 %437  ;;  %v412_v6 = vand.u32 2147483647, %v408_v1  ;;  %v413_v7 = vand.u32 2147483647, %v409_v2  ;;  %v478_v22 = vand.u32 2147483647, %v474_v14 }
  0x99   : > { %v442_v4 = vsub.f32 %v1958_v20, %v1979_v36  ;;  %v440_v5 = vsub.f32 %v1961_v21, %v1979_v36  ;;  %v441_v18 = vsub.f32 %v1966_v26, %v1979_v36  ;;  %v443_v25 = vsub.f32 %v1976_v33, %v1979_v36 }
  0x9a   : > { %v480_v29 = vand.u32 2147483647, %v476_v24 }
  0x9b   : > { %v446_v9 = vand.u32 2147483647, %v442_v4  ;;  %v444_v12 = vand.u32 2147483647, %v440_v5  ;;  %v445_v23 = vand.u32 2147483647, %v441_v18 }
  0x9c   : > { %v1981_v37 = vpop.permute.xlu0 %729  ;;  %318 = vrot.lane.b32.xlu1 %v309_v34, %s1839_s7  ;;  %v447_v30 = vand.u32 2147483647, %v443_v25  ;;  %v475_v34 = vsub.f32 %v1966_v26, %v1948_v15 }
  0x9d   : > { %v1987_v40 = vpop.permute.xlu1 %505 }
  0x9e   : > { %v508_v32 = vsub.f32 %v1961_v21, %v1987_v40 }
  0xa0   : > { %322 = vrot.lane.b32.xlu1 %v311_v38, %s1839_s7  ;;  %v512_v36 = vand.u32 2147483647, %v508_v32  ;;  %v479_v38 = vand.u32 2147483647, %v475_v34 }
  0xa1   : > { %v1985_v39 = vpop.permute.xlu0 %828 }
  0xa2   : > { %v1991_v44 = vpop.permute.xlu1 %539 }
  0xa6   : > { %v336_v41 = vpop.permute.xlu0 %335 }
  0xa7   : > { %v338_v42 = vsub.f32 %v1961_v21, %v336_v41  ;;  %v339_v43 = vsub.f32 %v1966_v26, %v336_v41  ;;  %v340_v47 = vsub.f32 %v1958_v20, %v336_v41  ;;  %v341_v48 = vsub.f32 %v1976_v33, %v336_v41  ;;  %v1999_v53 = vpop.permute.xlu1 %663 }
  0xa8   : > { %v510_v41 = vsub.f32 %v1958_v20, %v1987_v40 }
  0xa9   : > { %v342_v45 = vand.u32 2147483647, %v338_v42  ;;  %v343_v46 = vand.u32 2147483647, %v339_v43  ;;  %v344_v51 = vand.u32 2147483647, %v340_v47  ;;  %v477_v42 = vsub.f32 %v1976_v33, %v1948_v15 }
  0xaa   : > { %v345_v52 = vand.u32 2147483647, %v341_v48  ;;  %v1753_v43 = vld [vmem:[%s1946_s6 + $0x1] ss:$8 sm:$0xf]  ;;  %v542_v47 = vsub.f32 %v1961_v21, %v1991_v44  ;;  %v509_v48 = vsub.f32 %v1966_v26, %v1987_v40  ;;  %v511_v21 = vsub.f32 %v1976_v33, %v1987_v40  ;;  %v2128_v32 = vpop.permute.xlu0 %984 }
  0xab   : > { %350 = vrot.lane.b32.xlu0 %v342_v45, %s1840_s8  ;;  %352 = vrot.lane.b32.xlu1 %v343_v46, %s1840_s8  ;;  %v514_v45 = vand.u32 2147483647, %v510_v41  ;;  %v481_v46 = vand.u32 2147483647, %v477_v42  ;;  %v2065_v15 = vrot.slane %v1753_v43, %v1952_v17  ;;  %v2085_v40 = vrot.slane %v1753_v43, %v1955_v19 }
  0xac   : > { %v2009_v60 = vpop.permute.xlu1 %696  ;;  %v546_v50 = vand.u32 2147483647, %v542_v47  ;;  %v515_v57 = vand.u32 2147483647, %v511_v21 }
  0xad   : > { %v633_v58 = vsub.f32 %v2065_v15, %v1971_v31  ;;  %v666_v4 = vsub.f32 %v2065_v15, %v1999_v53  ;;  %v634_v5 = vsub.f32 %v2085_v40, %v1971_v31  ;;  %v699_v18 = vsub.f32 %v2065_v15, %v2009_v60 }
  0xae   : > { %v700_v41 = vsub.f32 %v2085_v40, %v2009_v60 }
  0xaf   : > { %354 = vrot.lane.b32.xlu0 %v344_v51, %s1840_s8  ;;  %356 = vrot.lane.b32.xlu1 %v345_v52, %s1840_s8  ;;  %v513_v51 = vand.u32 2147483647, %v509_v48  ;;  %v544_v52 = vsub.f32 %v1958_v20, %v1991_v44  ;;  %v543_v20 = vsub.f32 %v1966_v26, %v1991_v44  ;;  %v637_v59 = vand.u32 2147483647, %v633_v58 }
  0xb0   : > { %v2096_v26 = vrot.slane %v1753_v43, %v1968_v27  ;;  %v703_v24 = vand.u32 2147483647, %v699_v18  ;;  %v832_v18 = vsub.f32 %v2085_v40, %v1985_v39 }
  0xb1   : > { %v2015_v3 = vpop.permute.xlu1 %762  ;;  %v548_v56 = vand.u32 2147483647, %v544_v52 }
  0xb2   : > { %v702_v47 = vsub.f32 %v2096_v26, %v2009_v60 }
  0xb3   : > { %384 = vrot.lane.b32.xlu0 %v376_v54, %s1841_s9  ;;  %386 = vrot.lane.b32.xlu1 %v377_v55, %s1841_s9  ;;  %v2076_v55 = vrot.slane %v1753_v43, %v1950_v16  ;;  %v704_v43 = vand.u32 2147483647, %v700_v41 }
  0xb5   : > { %v701_v25 = vsub.f32 %v2076_v55, %v2009_v60  ;;  %v766_v60 = vsub.f32 %v2085_v40, %v2015_v3 }
  0xb6   : > { %v2025_v13 = vpop.permute.xlu1 %795 }
  0xb7   : > { %388 = vrot.lane.b32.xlu0 %v378_v61, %s1841_s9  ;;  %390 = vrot.lane.b32.xlu1 %v379_v62, %s1841_s9  ;;  %v547_v61 = vand.u32 2147483647, %v543_v20  ;;  %v635_v62 = vsub.f32 %v2076_v55, %v1971_v31  ;;  %v705_v34 = vand.u32 2147483647, %v701_v25  ;;  %v834_v25 = vsub.f32 %v2096_v26, %v1985_v39 }
  0xb9   : > { %v639_v1 = vand.u32 2147483647, %v635_v62  ;;  %v768_v62 = vsub.f32 %v2096_v26, %v2015_v3 }
  0xbb   : > { %418 = vrot.lane.b32.xlu0 %v410_v63, %s1842_s10  ;;  %420 = vrot.lane.b32.xlu1 %v411_v0, %s1842_s10  ;;  %v2037_v28 = vpop.permute.xlu1 %861  ;;  %v545_v63 = vsub.f32 %v1976_v33, %v1991_v44  ;;  %v670_v44 = vand.u32 2147483647, %v666_v4 }
  0xbc   : > { %v865_v41 = vsub.f32 %v2085_v40, %v2037_v28 }
  0xbd   : > { %v549_v2 = vand.u32 2147483647, %v545_v63  ;;  %v765_v63 = vsub.f32 %v2065_v15, %v2015_v3 }
  0xbf   : > { %422 = vrot.lane.b32.xlu0 %v412_v6, %s1842_s10  ;;  %424 = vrot.lane.b32.xlu1 %v413_v7, %s1842_s10  ;;  %v638_v6 = vand.u32 2147483647, %v634_v5  ;;  %v668_v7 = vsub.f32 %v2076_v55, %v1999_v53 }
  0xc0   : > { %v2047_v35 = vpop.permute.xlu1 %951 }
  0xc3   : > { %456 = vrot.lane.b32.xlu0 %v446_v9, %s1843_s11  ;;  %452 = vrot.lane.b32.xlu1 %v444_v12, %s1843_s11  ;;  %v636_v9 = vsub.f32 %v2096_v26, %v1971_v31  ;;  %v672_v12 = vand.u32 2147483647, %v668_v7  ;;  %v798_v7 = vsub.f32 %v2065_v15, %v2025_v13 }
  0xc5   : > { %v2060_v49 = vpop.permute.xlu1 %1017  ;;  %v640_v14 = vand.u32 2147483647, %v636_v9 }
  0xc7   : > { %486 = vrot.lane.b32.xlu0 %v478_v22, %s1844_s12  ;;  %454 = vrot.lane.b32.xlu1 %v445_v23, %s1843_s11  ;;  %v667_v22 = vsub.f32 %v2085_v40, %v1999_v53 }
  0xc9   : > { %v671_v31 = vand.u32 2147483647, %v667_v22  ;;  %v800_v22 = vsub.f32 %v2076_v55, %v2025_v13 }
  0xca   : > { %v2073_v54 = vpop.permute.xlu1 %1050 }
  0xcb   : > { %490 = vrot.lane.b32.xlu0 %v480_v29, %s1844_s12  ;;  %458 = vrot.lane.b32.xlu1 %v447_v30, %s1843_s11  ;;  %v669_v29 = vsub.f32 %v2096_v26, %v1999_v53  ;;  %v2136_v53 = vpop.permute.xlu0 %1338 }
  0xcc   : > { %2760 = vst [vmem:[#allocation4_spill] sm:$0xff] %v2136_v53 }
  0xcf   : > { %520 = vrot.lane.b32.xlu0 %v512_v36, %s1845_s13  ;;  %488 = vrot.lane.b32.xlu1 %v479_v38, %s1844_s12  ;;  %v2091_v0 = vpop.permute.xlu1 %1116  ;;  %v673_v36 = vand.u32 2147483647, %v669_v29  ;;  %v732_v38 = vsub.f32 %v2065_v15, %v1981_v37  ;;  %v2148_v52 = vpop.permute.xlu0 %1083  ;;  %v831_v29 = vsub.f32 %v2065_v15, %v1985_v39 }
  0xd1   : > { %v736_v42 = vand.u32 2147483647, %v732_v38  ;;  %v835_v38 = vand.u32 2147483647, %v831_v29 }
  0xd3   : > { %524 = vrot.lane.b32.xlu0 %v514_v45, %s1845_s13  ;;  %492 = vrot.lane.b32.xlu1 %v481_v46, %s1844_s12  ;;  %v734_v46 = vsub.f32 %v2076_v55, %v1981_v37  ;;  %v2160_v58 = vpop.permute.xlu0 %1404 }
  0xd4   : > { %v2104_v33 = vpop.permute.xlu1 %1149  ;;  %2762 = vst [vmem:[#allocation6_spill] sm:$0xff] %v2160_v58 }
  0xd5   : > { %v738_v48 = vand.u32 2147483647, %v734_v46 }
  0xd7   : > { %554 = vrot.lane.b32.xlu0 %v546_v50, %s1846_s14  ;;  %522 = vrot.lane.b32.xlu1 %v513_v51, %s1845_s13  ;;  %v706_v50 = vand.u32 2147483647, %v702_v47  ;;  %v733_v51 = vsub.f32 %v2085_v40, %v1981_v37  ;;  %v2175_v4 = vpop.permute.xlu0 %1182 }
  0xd9   : > { %v2116_v23 = vpop.permute.xlu1 %1272 }
  0xdb   : > { %558 = vrot.lane.b32.xlu0 %v548_v56, %s1846_s14  ;;  %526 = vrot.lane.b32.xlu1 %v515_v57, %s1845_s13  ;;  %v737_v56 = vand.u32 2147483647, %v733_v51  ;;  %v735_v57 = vsub.f32 %v2096_v26, %v1981_v37  ;;  %v769_v37 = vand.u32 2147483647, %v765_v63  ;;  %v867_v51 = vsub.f32 %v2096_v26, %v2037_v28 }
  0xde   : > { %v2126_v30 = vpop.permute.xlu1 %1305 }
  0xdf   : > { %645 = vrot.lane.b32.xlu0 %v637_v59, %s1839_s7  ;;  %556 = vrot.lane.b32.xlu1 %v547_v61, %s1846_s14  ;;  %v770_v59 = vand.u32 2147483647, %v766_v60  ;;  %v739_v61 = vand.u32 2147483647, %v735_v57  ;;  %v871_v57 = vand.u32 2147483647, %v867_v51 }
  0xe3   : > { %649 = vrot.lane.b32.xlu0 %v639_v1, %s1839_s7  ;;  %560 = vrot.lane.b32.xlu1 %v549_v2, %s1846_s14  ;;  %v2138_v45 = vpop.permute.xlu1 %266  ;;  %v799_v1 = vsub.f32 %v2085_v40, %v2025_v13  ;;  %v767_v2 = vsub.f32 %v2076_v55, %v2015_v3  ;;  %v2187_v3 = vpop.permute.xlu0 %1503  ;;  %v864_v40 = vsub.f32 %v2065_v15, %v2037_v28 }
  0xe4   : > { %2765 = vst [vmem:[#allocation9_spill] sm:$0xff] %v2187_v3 }
  0xe7   : > { %678 = vrot.lane.b32.xlu0 %v670_v44, %s1840_s8  ;;  %647 = vrot.lane.b32.xlu1 %v638_v6, %s1839_s7  ;;  %v803_v44 = vand.u32 2147483647, %v799_v1  ;;  %v771_v6 = vand.u32 2147483647, %v767_v2 }
  0xe8   : > { %v2152_v21 = vpop.permute.xlu1 %1371 }
  0xe9   : > { %2761 = vst [vmem:[#allocation5_spill] sm:$0xff] %v2152_v21 }
  0xeb   : > { %682 = vrot.lane.b32.xlu0 %v672_v12, %s1840_s8  ;;  %651 = vrot.lane.b32.xlu1 %v640_v14, %s1839_s7  ;;  %v802_v14 = vand.u32 2147483647, %v798_v7 }
  0xed   : > { %v2162_v20 = vpop.permute.xlu1 %1437 }
  0xee   : > { %2763 = vst [vmem:[#allocation7_spill] sm:$0xff] %v2162_v20 }
  0xef   : > { %711 = vrot.lane.b32.xlu0 %v703_v24, %s1841_s9  ;;  %680 = vrot.lane.b32.xlu1 %v671_v31, %s1840_s8  ;;  %v836_v24 = vand.u32 2147483647, %v832_v18  ;;  %v804_v31 = vand.u32 2147483647, %v800_v22 }
  0xf2   : > { %v2177_v5 = vpop.permute.xlu1 %1470 }
  0xf3   : > { %715 = vrot.lane.b32.xlu0 %v705_v34, %s1841_s9  ;;  %684 = vrot.lane.b32.xlu1 %v673_v36, %s1840_s8  ;;  %2764 = vst [vmem:[#allocation8_spill] sm:$0xff] %v2177_v5  ;;  %v2201_v34 = vpop.permute.xlu0 %594 }
  0xf7   : > { %744 = vrot.lane.b32.xlu0 %v736_v42, %s1842_s10  ;;  %713 = vrot.lane.b32.xlu1 %v704_v43, %s1841_s9  ;;  %v833_v42 = vsub.f32 %v2076_v55, %v1985_v39  ;;  %v1756_v43 = vld [vmem:[%s1946_s6 + $0x2] ss:$8 sm:$0xf] }
  0xf8   : > { %v2225_v39 = vrot.slane %v1756_v43, %v1955_v19  ;;  %v2238_v15 = vrot.slane %v1756_v43, %v1968_v27 }
  0xfa   : > { %v957_v2 = vsub.f32 %v2238_v15, %v2047_v35 }
  0xfb   : > { %748 = vrot.lane.b32.xlu0 %v738_v48, %s1842_s10  ;;  %717 = vrot.lane.b32.xlu1 %v706_v50, %s1841_s9  ;;  %v869_v48 = vand.u32 2147483647, %v865_v41  ;;  %v837_v50 = vand.u32 2147483647, %v833_v42  ;;  %v1021_v42 = vsub.f32 %v2225_v39, %v2060_v49 }
  0xfd   : > { %v1025_v51 = vand.u32 2147483647, %v1021_v42 }
  0xff   : > { %915 = vperm.xlu0 %1819, %v1907_v10   ;;  %746 = vrot.lane.b32.xlu1 %v737_v56, %s1842_s10  ;;  %v772_v10 = vand.u32 2147483647, %v768_v62  ;;  %v2241_v62 = vrot.slane %v1756_v43, %v1952_v17 }
 0x101   : > { %v987_v29 = vsub.f32 %v2241_v62, %v2128_v32 }
 0x103   : > { %779 = vrot.lane.b32.xlu0 %v770_v59, %s1843_s11  ;;  %750 = vrot.lane.b32.xlu1 %v739_v61, %s1842_s10  ;;  %v868_v59 = vand.u32 2147483647, %v864_v40  ;;  %v955_v61 = vsub.f32 %v2225_v39, %v2047_v35  ;;  %v991_v41 = vand.u32 2147483647, %v987_v29 }
 0x104   : > { %1821 = vset.pattern.permute.xlu0 %v1836_v8  ;;  %v801_v8 = vsub.f32 %v2096_v26, %v2025_v13  ;;  %v838_v13 = vand.u32 2147483647, %v834_v25  ;;  %v866_v26 = vsub.f32 %v2076_v55, %v2037_v28  ;;  %v954_v28 = vsub.f32 %v2241_v62, %v2047_v35 }
 0x105   : > { %v2254_v55 = vrot.slane %v1756_v43, %v1950_v16  ;;  %v990_v25 = vsub.f32 %v2238_v15, %v2128_v32 }
 0x106   : > { %v805_v12 = vand.u32 2147483647, %v801_v8  ;;  %v870_v1 = vand.u32 2147483647, %v866_v26  ;;  %v961_v8 = vand.u32 2147483647, %v957_v2 }
 0x107   : > { %783 = vrot.lane.b32.xlu0 %v772_v10, %s1843_s11  ;;  %777 = vrot.lane.b32.xlu1 %v769_v37, %s1843_s11  ;;  %v959_v37 = vand.u32 2147483647, %v955_v61  ;;  %v958_v7 = vand.u32 2147483647, %v954_v28  ;;  %v989_v43 = vsub.f32 %v2254_v55, %v2128_v32  ;;  %v1022_v2 = vsub.f32 %v2254_v55, %v2060_v49 }
 0x108   : > { %v1154_v58 = vsub.f32 %v2254_v55, %v2104_v33 }
 0x109   : > { %v993_v40 = vand.u32 2147483647, %v989_v43 }
 0x10a   : > { %v2189_v9 = vpop.permute.xlu1 %316  ;;  %v2214_v46 = vpop.permute.xlu0 %320 }
 0x10b   : > { %812 = vrot.lane.b32.xlu0 %v803_v44, %s1844_s12  ;;  %781 = vrot.lane.b32.xlu1 %v771_v6, %s1843_s11 }
 0x10e   : > { %v2203_v36 = vpop.permute.xlu1 %318 }
 0x10f   : > { %816 = vrot.lane.b32.xlu0 %v805_v12, %s1844_s12  ;;  %810 = vrot.lane.b32.xlu1 %v802_v14, %s1844_s12  ;;  %v988_v12 = vsub.f32 %v2225_v39, %v2128_v32  ;;  %v956_v14 = vsub.f32 %v2254_v55, %v2047_v35 }
 0x112   : > { %v2216_v47 = vpop.permute.xlu1 %322 }
 0x113   : > { %845 = vrot.lane.b32.xlu0 %v836_v24, %s1845_s13  ;;  %814 = vrot.lane.b32.xlu1 %v804_v31, %s1844_s12  ;;  %v992_v24 = vand.u32 2147483647, %v988_v12  ;;  %v960_v31 = vand.u32 2147483647, %v956_v14  ;;  %v1026_v12 = vand.u32 2147483647, %v1022_v2  ;;  %v1056_v14 = vsub.f32 %v2238_v15, %v2073_v54 }
 0x114   : > { %v247_v2 = vld [vmem:[%s1946_s6] ss:$8 sm:$0x7] }
 0x117   : > { %849 = vrot.lane.b32.xlu0 %v838_v13, %s1845_s13  ;;  %843 = vrot.lane.b32.xlu1 %v835_v38, %s1845_s13  ;;  %v994_v38 = vand.u32 2147483647, %v990_v25  ;;  %v1060_v25 = vand.u32 2147483647, %v1056_v14 }
 0x11b   : > { %878 = vrot.lane.b32.xlu0 %v869_v48, %s1846_s14  ;;  %847 = vrot.lane.b32.xlu1 %v837_v50, %s1845_s13 }
 0x11d   : > { %v2227_v56 = vpop.permute.xlu0 %350  ;;  %v2229_v60 = vpop.permute.xlu1 %352 }
 0x11f   : > { %882 = vrot.lane.b32.xlu0 %v871_v57, %s1846_s14  ;;  %876 = vrot.lane.b32.xlu1 %v868_v59, %s1846_s14  ;;  %v1023_v57 = vsub.f32 %v2238_v15, %v2060_v49  ;;  %v1020_v59 = vsub.f32 %v2241_v62, %v2060_v49 }
 0x121   : > { %v2243_v63 = vpop.permute.xlu0 %354  ;;  %v2245_v10 = vpop.permute.xlu1 %356  ;;  %v1027_v26 = vand.u32 2147483647, %v1023_v57  ;;  %v1088_v57 = vsub.f32 %v2254_v55, %v2148_v52 }
 0x123   : > { %968 = vrot.lane.b32.xlu0 %v959_v37, %s1839_s7  ;;  %880 = vrot.lane.b32.xlu1 %v870_v1, %s1846_s14  ;;  %v1024_v37 = vand.u32 2147483647, %v1020_v59  ;;  %v1054_v1 = vsub.f32 %v2225_v39, %v2073_v54 }
 0x125   : > { %v2256_v44 = vpop.permute.xlu0 %384  ;;  %v2258_v6 = vpop.permute.xlu1 %386 }
 0x127   : > { %972 = vrot.lane.b32.xlu0 %v961_v8, %s1839_s7  ;;  %966 = vrot.lane.b32.xlu1 %v958_v7, %s1839_s7  ;;  %v1058_v7 = vand.u32 2147483647, %v1054_v1  ;;  %v1087_v1 = vsub.f32 %v2225_v39, %v2148_v52 }
 0x129   : > { %v2266_v18 = vpop.permute.xlu0 %388  ;;  %v2268_v22 = vpop.permute.xlu1 %390 }
 0x12b   : > { %1001 = vrot.lane.b32.xlu0 %v992_v24, %s1840_s8  ;;  %970 = vrot.lane.b32.xlu1 %v960_v31, %s1839_s7  ;;  %v1053_v24 = vsub.f32 %v2241_v62, %v2073_v54 }
 0x12d   : > { %v2276_v35 = vpop.permute.xlu0 %418  ;;  %v2278_v13 = vpop.permute.xlu1 %420  ;;  %v1057_v29 = vand.u32 2147483647, %v1053_v24  ;;  %v1091_v24 = vand.u32 2147483647, %v1087_v1  ;;  %v260_v1 = vrot.slane %v247_v2, %v1950_v16 }
 0x12f   : > { %1005 = vrot.lane.b32.xlu0 %v994_v38, %s1840_s8  ;;  %999 = vrot.lane.b32.xlu1 %v991_v41, %s1840_s8  ;;  %v1086_v38 = vsub.f32 %v2241_v62, %v2148_v52  ;;  %v1055_v41 = vsub.f32 %v2254_v55, %v2073_v54 }
 0x131   : > { %v2286_v48 = vpop.permute.xlu0 %422  ;;  %v2288_v50 = vpop.permute.xlu1 %424 }
 0x133   : > { %1034 = vrot.lane.b32.xlu0 %v1025_v51, %s1841_s9  ;;  %1003 = vrot.lane.b32.xlu1 %v993_v40, %s1840_s8  ;;  %v1090_v51 = vand.u32 2147483647, %v1086_v38  ;;  %v1059_v40 = vand.u32 2147483647, %v1055_v41  ;;  %v1120_v41 = vsub.f32 %v2225_v39, %v2091_v0 }
 0x134   : > { %v2357_v38 = vld [vmem:[%s1946_s6 + $0x1] ss:$8 sm:$0x7] }
 0x135   : > { %v2296_v32 = vpop.permute.xlu0 %456  ;;  %v2298_v61 = vpop.permute.xlu1 %452  ;;  %v584_v3 = vrot.slane %v2357_v38, %v1955_v19  ;;  %v1124_v5 = vand.u32 2147483647, %v1120_v41 }
 0x137   : > { %1038 = vrot.lane.b32.xlu0 %v1027_v26, %s1841_s9  ;;  %1032 = vrot.lane.b32.xlu1 %v1024_v37, %s1841_s9  ;;  %v1092_v26 = vand.u32 2147483647, %v1088_v57  ;;  %v1119_v37 = vsub.f32 %v2241_v62, %v2091_v0 }
 0x139   : > { %v2306_v28 = vpop.permute.xlu0 %486  ;;  %v2308_v8 = vpop.permute.xlu1 %454  ;;  %v1123_v14 = vand.u32 2147483647, %v1119_v37 }
 0x13b   : > { %1067 = vrot.lane.b32.xlu0 %v1058_v7, %s1842_s10  ;;  %1036 = vrot.lane.b32.xlu1 %v1026_v12, %s1841_s9 }
 0x13d   : > { %v2316_v49 = vpop.permute.xlu0 %490  ;;  %v2318_v31 = vpop.permute.xlu1 %458 }
 0x13f   : > { %1071 = vrot.lane.b32.xlu0 %v1060_v25, %s1842_s10  ;;  %1065 = vrot.lane.b32.xlu1 %v1057_v29, %s1842_s10  ;;  %v1121_v25 = vsub.f32 %v2254_v55, %v2091_v0  ;;  %v1089_v29 = vsub.f32 %v2238_v15, %v2148_v52  ;;  %v1152_v52 = vsub.f32 %v2241_v62, %v2104_v33 }
 0x141   : > { %v2326_v42 = vpop.permute.xlu0 %520  ;;  %v2328_v43 = vpop.permute.xlu1 %488  ;;  %v1093_v37 = vand.u32 2147483647, %v1089_v29 }
 0x143   : > { %1098 = vrot.lane.b32.xlu0 %v1090_v51, %s1843_s11  ;;  %1069 = vrot.lane.b32.xlu1 %v1059_v40, %s1842_s10  ;;  %v256_v51 = vrot.slane %v247_v2, %v1955_v19 }
 0x145   : > { %v2334_v59 = vpop.permute.xlu0 %524  ;;  %v2336_v54 = vpop.permute.xlu1 %492  ;;  %v270_v20 = vsub.f32 %v256_v51, %v2138_v45  ;;  %v1185_v51 = vsub.f32 %v2241_v62, %v2175_v4  ;;  %v1153_v62 = vsub.f32 %v2225_v39, %v2104_v33 }
 0x147   : > { %1102 = vrot.lane.b32.xlu0 %v1092_v26, %s1843_s11  ;;  %1236 = vperm.xlu1 %1820, %v1913_v11   ;;  %v252_v11 = vrot.slane %v247_v2, %v1952_v17  ;;  %v1125_v26 = vand.u32 2147483647, %v1121_v25  ;;  %v1122_v25 = vsub.f32 %v2238_v15, %v2091_v0 }
 0x149   : > { %v2345_v7 = vpop.permute.xlu0 %554  ;;  %v2347_v12 = vpop.permute.xlu1 %522  ;;  %v269_v29 = vsub.f32 %v252_v11, %v2138_v45 }
 0x14b   : > { %1131 = vrot.lane.b32.xlu0 %v1123_v14, %s1844_s12  ;;  %1100 = vrot.lane.b32.xlu1 %v1091_v24, %s1843_s11  ;;  %v1759_v14 = vld [vmem:[%s1946_s6 + $0x3] ss:$8 sm:$0xf]  ;;  %v580_v24 = vrot.slane %v2357_v38, %v1952_v17  ;;  %v272_v53 = vand.u32 2147483647, %v269_v29 }
 0x14c   : > { %v2389_v41 = vrot.slane %v1759_v14, %v1952_v17  ;;  %v2392_v0 = vrot.slane %v1759_v14, %v1950_v16  ;;  %v2395_v11 = vrot.slane %v1759_v14, %v1955_v19  ;;  %v2404_v21 = vrot.slane %v1759_v14, %v1968_v27 }
 0x14d   : > { %v2362_v40 = vpop.permute.xlu0 %558  ;;  %v2364_v57 = vpop.permute.xlu1 %526  ;;  %v1126_v17 = vand.u32 2147483647, %v1122_v25  ;;  %v1186_v19 = vsub.f32 %v2225_v39, %v2175_v4  ;;  %v325_v27 = vsel %vm324_vm0, %v2189_v9, %v2203_v36  ;;  %v1188_v39 = vsub.f32 %v2238_v15, %v2175_v4 }
 0x14e   : > { %2766 = vst [vmem:[#allocation10_spill] sm:$0xff] %v2364_v57  ;;  %v1158_v57 = vand.u32 2147483647, %v1154_v58  ;;  %v1189_v58 = vand.u32 2147483647, %v1185_v51  ;;  %v359_v9 = vsel %vm358_vm1, %v2227_v56, %v2229_v60  ;;  %v2438_v51 = vsub.f32 %v580_v24, %v2201_v34 }
 0x14f   : > { %1135 = vrot.lane.b32.xlu0 %v1125_v26, %s1844_s12  ;;  %1104 = vrot.lane.b32.xlu1 %v1093_v37, %s1843_s11  ;;  %v1156_v37 = vand.u32 2147483647, %v1152_v52  ;;  %v1187_v52 = vsub.f32 %v2254_v55, %v2175_v4  ;;  %v326_v55 = vsel %vm324_vm0, %v2203_v36, %v2214_v46  ;;  %v360_v36 = vsel %vm358_vm1, %v2229_v60, %v2243_v63 }
 0x150   : > { %v1157_v29 = vand.u32 2147483647, %v1153_v62  ;;  %v1190_v4 = vand.u32 2147483647, %v1186_v19  ;;  %v327_v56 = vsel %vm324_vm0, %v2214_v46, %v2216_v47  ;;  %v393_v60 = vsel %vm392_vm2, %v2256_v44, %v2258_v6 }
 0x151   : > { %v2380_v2 = vpop.permute.xlu0 %645  ;;  %v2382_v26 = vpop.permute.xlu1 %556  ;;  %v1191_v14 = vand.u32 2147483647, %v1187_v52  ;;  %v361_v46 = vsel %vm358_vm1, %v2243_v63, %v2245_v10  ;;  %v427_v47 = vsel %vm426_vm3, %v2276_v35, %v2278_v13  ;;  %v428_v44 = vsel %vm426_vm3, %v2278_v13, %v2286_v48 }
 0x152   : > { %2767 = vst [vmem:[#allocation11_spill] sm:$0xff] %v2380_v2  ;;  %v273_v2 = vand.u32 2147483647, %v270_v20  ;;  %v271_v20 = vsub.f32 %v260_v1, %v2138_v45  ;;  %v1155_v45 = vsub.f32 %v2238_v15, %v2104_v33  ;;  %v394_v33 = vsel %vm392_vm2, %v2258_v6, %v2266_v18 }
 0x153   : > { %1164 = vrot.lane.b32.xlu0 %v1156_v37, %s1845_s13  ;;  %1133 = vrot.lane.b32.xlu1 %v1124_v5, %s1844_s12  ;;  %v2450_v15 = vsub.f32 %v584_v3, %v2201_v34  ;;  %v395_v63 = vsel %vm392_vm2, %v2266_v18, %v2268_v22  ;;  %v461_v10 = vsel %vm460_vm4, %v2298_v61, %v2308_v8 }
 0x154   : > { %v332_v1 = vadd.f32 %v326_v55, %v273_v2  ;;  %v1159_v3 = vand.u32 2147483647, %v1155_v45  ;;  %v1275_v55 = vsub.f32 %v2389_v41, %v2116_v23  ;;  %v462_v35 = vsel %vm460_vm4, %v2308_v8, %v2296_v32 }
 0x155   : > { %v2408_v37 = vpop.permute.xlu0 %649  ;;  %v2410_v5 = vpop.permute.xlu1 %560  ;;  %v429_v18 = vsel %vm426_vm3, %v2286_v48, %v2288_v50  ;;  %v495_v22 = vsel %vm494_vm5, %v2306_v28, %v2328_v43  ;;  %v496_v61 = vsel %vm494_vm5, %v2328_v43, %v2316_v49  ;;  %v1277_v8 = vsub.f32 %v2392_v0, %v2116_v23 }
 0x156   : > { %v366_v2 = vadd.f32 %v360_v36, %v332_v1  ;;  %v1279_v1 = vand.u32 2147483647, %v1275_v55  ;;  %v463_v48 = vsel %vm460_vm4, %v2296_v32, %v2318_v31  ;;  %v529_v50 = vsel %vm528_vm6, %v2326_v42, %v2347_v12 }
 0x157   : > { %1168 = vrot.lane.b32.xlu0 %v1158_v57, %s1845_s13  ;;  %1137 = vrot.lane.b32.xlu1 %v1126_v17, %s1844_s12  ;;  %v331_v57 = vadd.f32 %v325_v27, %v272_v53  ;;  %v274_v53 = vand.u32 2147483647, %v271_v20  ;;  %v530_v28 = vsel %vm528_vm6, %v2347_v12, %v2334_v59  ;;  %v1276_v43 = vsub.f32 %v2395_v11, %v2116_v23 }
 0x158   : > { %v400_v52 = vadd.f32 %v394_v33, %v366_v2  ;;  %v1192_v33 = vand.u32 2147483647, %v1188_v39  ;;  %v497_v32 = vsel %vm494_vm5, %v2316_v49, %v2336_v54  ;;  %v563_v31 = vsel %vm562_vm7, %v2345_v7, %v2382_v26 }
 0x159   : > { %v2433_v17 = vpop.permute.xlu0 %678  ;;  %v2435_v25 = vpop.permute.xlu1 %647  ;;  %v365_v19 = vadd.f32 %v359_v9, %v331_v57  ;;  %v333_v6 = vadd.f32 %v327_v56, %v274_v53  ;;  %v564_v42 = vsel %vm562_vm7, %v2382_v26, %v2362_v40  ;;  %v1281_v12 = vand.u32 2147483647, %v1277_v8 }
 0x15a   : > { %v1308_v39 = vsub.f32 %v2389_v41, %v2126_v30  ;;  %v2768_v49 = vrot.slane %v2357_v38, %v1950_v16  ;;  %v565_v38 = vsel %vm562_vm7, %v2362_v40, %v2410_v5  ;;  %v2771_v5 = vld [vmem:[#allocation4_spill] sm:$0xff] }
 0x15b   : > { %1197 = vrot.lane.b32.xlu0 %v1189_v58, %s1846_s14  ;;  %1166 = vrot.lane.b32.xlu1 %v1157_v29, %s1845_s13  ;;  %v399_v24 = vadd.f32 %v393_v60, %v365_v19  ;;  %v367_v13 = vadd.f32 %v361_v46, %v333_v6  ;;  %v434_v58 = vadd.f32 %v428_v44, %v400_v52  ;;  %v600_v6 = vand.u32 2147483647, %v2438_v51 }
 0x15c   : > { %v599_v54 = vsub.f32 %v2768_v49, %v2201_v34  ;;  %v1278_v34 = vsub.f32 %v2404_v21, %v2116_v23  ;;  %v1312_v55 = vand.u32 2147483647, %v1308_v39  ;;  %v1341_v23 = vsub.f32 %v2389_v41, %v2771_v5 }
 0x15d   : > { %v2463_v62 = vpop.permute.xlu0 %682  ;;  %v2465_v27 = vpop.permute.xlu1 %651  ;;  %v433_v20 = vadd.f32 %v427_v47, %v399_v24  ;;  %v401_v9 = vadd.f32 %v395_v63, %v367_v13  ;;  %v601_v24 = vand.u32 2147483647, %v2450_v15  ;;  %v1280_v63 = vand.u32 2147483647, %v1276_v43 }
 0x15e   : > { %v654_v15 = vsel %vm324_vm0, %v2435_v25, %v2408_v37  ;;  %v1282_v8 = vand.u32 2147483647, %v1278_v34  ;;  %v1344_v34 = vsub.f32 %v2404_v21, %v2771_v5 }
 0x15f   : > { %1201 = vrot.lane.b32.xlu0 %v1191_v14, %s1846_s14  ;;  %1170 = vrot.lane.b32.xlu1 %v1159_v3, %s1845_s13  ;;  %v467_v36 = vadd.f32 %v461_v10, %v433_v20  ;;  %v468_v14 = vadd.f32 %v462_v35, %v434_v58  ;;  %v435_v29 = vadd.f32 %v429_v18, %v401_v9  ;;  %v2770_v35 = vld [vmem:[#allocation11_spill] sm:$0xff] }
 0x160   : > { %v1310_v10 = vsub.f32 %v2392_v0, %v2126_v30  ;;  %v653_v51 = vsel %vm324_vm0, %v2770_v35, %v2435_v25 }
 0x161   : > { %v712_v45 = vpop.permute.xlu0 %711  ;;  %v681_v57 = vpop.permute.xlu1 %680  ;;  %v501_v56 = vadd.f32 %v495_v22, %v467_v36  ;;  %v502_v60 = vadd.f32 %v496_v61, %v468_v14  ;;  %v469_v53 = vadd.f32 %v463_v48, %v435_v29  ;;  %v602_v22 = vand.u32 2147483647, %v599_v54 }
 0x162   : > { %v686_v61 = vsel %vm358_vm1, %v2433_v17, %v681_v57  ;;  %v687_v25 = vsel %vm358_vm1, %v681_v57, %v2463_v62  ;;  %v1309_v48 = vsub.f32 %v2395_v11, %v2126_v30 }
 0x163   : > { %1287 = vrot.lane.b32.xlu0 %v1279_v1, %s1839_s7  ;;  %1199 = vrot.lane.b32.xlu1 %v1190_v4, %s1846_s14  ;;  %v535_v19 = vadd.f32 %v529_v50, %v501_v56  ;;  %v536_v2 = vadd.f32 %v530_v28, %v502_v60  ;;  %v2769_v4 = vld [vmem:[#allocation10_spill] sm:$0xff]  ;;  %v503_v44 = vadd.f32 %v497_v32, %v469_v53  ;;  %v1314_v1 = vand.u32 2147483647, %v1310_v10 }
 0x164   : > { %v531_v7 = vsel %vm528_vm6, %v2334_v59, %v2769_v4  ;;  %v655_v50 = vsel %vm324_vm0, %v2408_v37, %v2465_v27  ;;  %v1345_v60 = vand.u32 2147483647, %v1341_v23  ;;  %v1311_v37 = vsub.f32 %v2404_v21, %v2126_v30  ;;  %v2772_v4 = vld [vmem:[#allocation5_spill] sm:$0xff] }
 0x165   : > { %v716_v46 = vpop.permute.xlu0 %715  ;;  %v685_v47 = vpop.permute.xlu1 %684  ;;  %v569_v26 = vadd.f32 %v563_v31, %v535_v19  ;;  %v570_v3 = vadd.f32 %v564_v42, %v536_v2  ;;  %v537_v52 = vadd.f32 %v531_v7, %v503_v44  ;;  %v1342_v30 = vsub.f32 %v2395_v11, %v2771_v5 }
 0x166   : > { %v688_v57 = vsel %vm358_vm1, %v2463_v62, %v685_v47  ;;  %v1315_v54 = vand.u32 2147483647, %v1311_v37  ;;  %v1374_v7 = vsub.f32 %v2389_v41, %v2772_v4  ;;  %v1375_v35 = vsub.f32 %v2395_v11, %v2772_v4 }
 0x167   : > { %1291 = vrot.lane.b32.xlu0 %v1281_v12, %s1839_s7  ;;  %1203 = vrot.lane.b32.xlu1 %v1192_v33, %s1846_s14  ;;  %v571_v13 = vadd.f32 %v565_v38, %v537_v52  ;;  %v603_v20 = vadd.f32 %v600_v6, %v569_v26  ;;  %v604_v58 = vadd.f32 %v601_v24, %v570_v3  ;;  %v1313_v12 = vand.u32 2147483647, %v1309_v48 }
 0x168   : > { %v1343_v33 = vsub.f32 %v2392_v0, %v2771_v5  ;;  %v1378_v6 = vand.u32 2147483647, %v1374_v7  ;;  %v1346_v24 = vand.u32 2147483647, %v1342_v30  ;;  %v1376_v38 = vsub.f32 %v2392_v0, %v2772_v4 }
 0x169   : > { %v714_v59 = vpop.permute.xlu1 %713  ;;  %v745_v18 = vpop.permute.xlu0 %744  ;;  %v659_v9 = vadd.f32 %v653_v51, %v603_v20  ;;  %v660_v36 = vadd.f32 %v654_v15, %v604_v58  ;;  %v605_v17 = vadd.f32 %v602_v22, %v571_v13  ;;  %v1379_v5 = vand.u32 2147483647, %v1375_v35 }
 0x16a   : > { %v720_v40 = vsel %vm392_vm2, %v714_v59, %v716_v46  ;;  %v719_v28 = vsel %vm392_vm2, %v712_v45, %v714_v59  ;;  %v1347_v49 = vand.u32 2147483647, %v1343_v33  ;;  %v1380_v59 = vand.u32 2147483647, %v1376_v38 }
 0x16b   : > { %1320 = vrot.lane.b32.xlu0 %v1312_v55, %s1840_s8  ;;  %1289 = vrot.lane.b32.xlu1 %v1280_v63, %s1839_s7  ;;  %v692_v29 = vadd.f32 %v686_v61, %v659_v9  ;;  %v693_v56 = vadd.f32 %v687_v25, %v660_v36  ;;  %v661_v27 = vadd.f32 %v655_v50, %v605_v17  ;;  %v1348_v55 = vand.u32 2147483647, %v1344_v34  ;;  %v2773_v63 = vld [vmem:[#allocation6_spill] sm:$0xff]  ;;  %v2774_v36 = vld [vmem:[#allocation7_spill] sm:$0xff] }
 0x16c   : > { %v1407_v10 = vsub.f32 %v2389_v41, %v2773_v63  ;;  %v1409_v23 = vsub.f32 %v2392_v0, %v2773_v63  ;;  %v1377_v13 = vsub.f32 %v2404_v21, %v2772_v4  ;;  %v1443_v4 = vsub.f32 %v2404_v21, %v2774_v36 }
 0x16d   : > { %v718_v14 = vpop.permute.xlu1 %717  ;;  %v725_v45 = vadd.f32 %v719_v28, %v692_v29  ;;  %v726_v32 = vadd.f32 %v720_v40, %v693_v56  ;;  %v749_v31 = vpop.permute.xlu0 %748  ;;  %v694_v2 = vadd.f32 %v688_v57, %v661_v27  ;;  %v1442_v56 = vsub.f32 %v2392_v0, %v2774_v36 }
 0x16e   : > { %v721_v43 = vsel %vm392_vm2, %v716_v46, %v718_v14  ;;  %v1411_v40 = vand.u32 2147483647, %v1407_v10  ;;  %v1381_v9 = vand.u32 2147483647, %v1377_v13  ;;  %v1440_v14 = vsub.f32 %v2389_v41, %v2774_v36  ;;  %v2778_v10 = vld [vmem:[#allocation9_spill] sm:$0xff] }
 0x16f   : > { %1324 = vrot.lane.b32.xlu0 %v1314_v1, %s1840_s8  ;;  %1293 = vrot.lane.b32.xlu1 %v1282_v8, %s1839_s7  ;;  %v727_v47 = vadd.f32 %v721_v43, %v694_v2  ;;  %v1413_v8 = vand.u32 2147483647, %v1409_v23  ;;  %v1408_v1 = vsub.f32 %v2395_v11, %v2773_v63  ;;  %v1410_v57 = vsub.f32 %v2404_v21, %v2773_v63 }
 0x170   : > { %v1444_v17 = vand.u32 2147483647, %v1440_v14  ;;  %v1447_v63 = vand.u32 2147483647, %v1443_v4  ;;  %v1506_v35 = vsub.f32 %v2389_v41, %v2778_v10 }
 0x171   : > { %v747_v42 = vpop.permute.xlu1 %746  ;;  %v1412_v29 = vand.u32 2147483647, %v1408_v1 }
 0x172   : > { %v752_v53 = vsel %vm426_vm3, %v745_v18, %v747_v42  ;;  %v753_v19 = vsel %vm426_vm3, %v747_v42, %v749_v31  ;;  %v1446_v42 = vand.u32 2147483647, %v1442_v56 }
 0x173   : > { %v758_v46 = vadd.f32 %v752_v53, %v725_v45  ;;  %v759_v62 = vadd.f32 %v753_v19, %v726_v32  ;;  %1353 = vrot.lane.b32.xlu0 %v1345_v60, %s1841_s9  ;;  %1322 = vrot.lane.b32.xlu1 %v1313_v12, %s1840_s8  ;;  %v1441_v32 = vsub.f32 %v2395_v11, %v2774_v36  ;;  %v1414_v12 = vand.u32 2147483647, %v1410_v57  ;;  %v2775_v53 = vld [vmem:[#allocation8_spill] sm:$0xff] }
 0x174   : > { %v1473_v19 = vsub.f32 %v2389_v41, %v2775_v53 }
 0x175   : > { %v751_v39 = vpop.permute.xlu1 %750  ;;  %v1445_v30 = vand.u32 2147483647, %v1441_v32  ;;  %v1509_v32 = vsub.f32 %v2404_v21, %v2778_v10 }
 0x176   : > { %v754_v44 = vsel %vm426_vm3, %v749_v31, %v751_v39 }
 0x177   : > { %v760_v26 = vadd.f32 %v754_v44, %v727_v47  ;;  %1357 = vrot.lane.b32.xlu0 %v1347_v49, %s1841_s9  ;;  %1326 = vrot.lane.b32.xlu1 %v1315_v54, %s1840_s8  ;;  %v1755_v47 = vld [vmem:[%s1946_s6 + $0x2] ss:$8 sm:$0x7]  ;;  %v1477_v49 = vand.u32 2147483647, %v1473_v19  ;;  %v1475_v54 = vsub.f32 %v2392_v0, %v2775_v53 }
 0x179   : > { %v778_v3 = vpop.permute.xlu1 %777 }
 0x17b   : > { %1386 = vrot.lane.b32.xlu0 %v1378_v6, %s1842_s10  ;;  %1355 = vrot.lane.b32.xlu1 %v1346_v24, %s1841_s9  ;;  %v2777_v24 = vld [vmem:[#allocation3_spill] sm:$0xff] }
 0x17c   : > { %v905_v38 = vrot.slane %v1755_v47, %v2777_v24 }
 0x17d   : > { %v782_v52 = vpop.permute.xlu1 %781 }
 0x17e   : > { %v2584_v51 = vpop.permute.xlu0 %915 }
 0x17f   : > { %1390 = vrot.lane.b32.xlu0 %v1380_v59, %s1842_s10  ;;  %1359 = vrot.lane.b32.xlu1 %v1348_v55, %s1841_s9  ;;  %v1479_v55 = vand.u32 2147483647, %v1475_v54 }
 0x181   : > { %v811_v15 = vpop.permute.xlu1 %810 }
 0x182   : > { %v780_v20 = vpop.permute.xlu0 %779 }
 0x183   : > { %v785_v58 = vsel %vm460_vm4, %v778_v3, %v780_v20  ;;  %v786_v18 = vsel %vm460_vm4, %v780_v20, %v782_v52  ;;  %1419 = vrot.lane.b32.xlu0 %v1411_v40, %s1843_s11  ;;  %1388 = vrot.lane.b32.xlu1 %v1379_v5, %s1842_s10  ;;  %v2776_v3 = vld [vmem:[#allocation2_spill] sm:$0xff]  ;;  %v909_v5 = vrot.slane %v1755_v47, %v1950_v16 }
 0x184   : > { %v791_v22 = vadd.f32 %v785_v58, %v758_v46  ;;  %v792_v61 = vadd.f32 %v786_v18, %v759_v62  ;;  %v901_v6 = vrot.slane %v1755_v47, %v2776_v3  ;;  %v919_v20 = vsub.f32 %v905_v38, %v2584_v51 }
 0x185   : > { %v815_v25 = vpop.permute.xlu1 %814 }
 0x186   : > { %v784_v48 = vpop.permute.xlu0 %783  ;;  %v918_v13 = vsub.f32 %v901_v6, %v2584_v51 }
 0x187   : > { %v787_v50 = vsel %vm460_vm4, %v782_v52, %v784_v48  ;;  %1423 = vrot.lane.b32.xlu0 %v1413_v8, %s1843_s11  ;;  %1392 = vrot.lane.b32.xlu1 %v1381_v9, %s1842_s10  ;;  %v920_v9 = vsub.f32 %v909_v5, %v2584_v51  ;;  %v922_v48 = vand.u32 2147483647, %v919_v20 }
 0x188   : > { %v793_v28 = vadd.f32 %v787_v50, %v760_v26  ;;  %v921_v1 = vand.u32 2147483647, %v918_v13 }
 0x189   : > { %v844_v43 = vpop.permute.xlu1 %843 }
 0x18a   : > { %v813_v60 = vpop.permute.xlu0 %812 }
 0x18b   : > { %v818_v33 = vsel %vm494_vm5, %v811_v15, %v813_v60  ;;  %v819_v37 = vsel %vm494_vm5, %v813_v60, %v815_v25  ;;  %1452 = vrot.lane.b32.xlu0 %v1444_v17, %s1844_s12  ;;  %1421 = vrot.lane.b32.xlu1 %v1412_v29, %s1843_s11  ;;  %v1474_v15 = vsub.f32 %v2395_v11, %v2775_v53 }
 0x18c   : > { %v824_v27 = vadd.f32 %v818_v33, %v791_v22  ;;  %v825_v45 = vadd.f32 %v819_v37, %v792_v61  ;;  %v1510_v22 = vand.u32 2147483647, %v1506_v35  ;;  %v1508_v61 = vsub.f32 %v2392_v0, %v2778_v10 }
 0x18d   : > { %v848_v31 = vpop.permute.xlu1 %847  ;;  %v1478_v41 = vand.u32 2147483647, %v1474_v15  ;;  %v1507_v29 = vsub.f32 %v2395_v11, %v2778_v10  ;;  %v923_v33 = vand.u32 2147483647, %v920_v9 }
 0x18e   : > { %v817_v2 = vpop.permute.xlu0 %816  ;;  %v1512_v0 = vand.u32 2147483647, %v1508_v61 }
 0x18f   : > { %v820_v46 = vsel %vm494_vm5, %v815_v25, %v817_v2  ;;  %1456 = vrot.lane.b32.xlu0 %v1446_v42, %s1844_s12  ;;  %1425 = vrot.lane.b32.xlu1 %v1414_v12, %s1843_s11  ;;  %v1476_v25 = vsub.f32 %v2404_v21, %v2775_v53 }
 0x190   : > { %v826_v62 = vadd.f32 %v820_v46, %v793_v28  ;;  %v1513_v46 = vand.u32 2147483647, %v1509_v32 }
 0x191   : > { %v877_v39 = vpop.permute.xlu1 %876  ;;  %v1480_v17 = vand.u32 2147483647, %v1476_v25 }
 0x192   : > { %v846_v7 = vpop.permute.xlu0 %845 }
 0x193   : > { %v851_v44 = vsel %vm528_vm6, %v844_v43, %v846_v7  ;;  %v852_v26 = vsel %vm528_vm6, %v846_v7, %v848_v31  ;;  %1485 = vrot.lane.b32.xlu0 %v1477_v49, %s1845_s13  ;;  %1454 = vrot.lane.b32.xlu1 %v1445_v30, %s1844_s12 }
 0x194   : > { %v857_v34 = vadd.f32 %v851_v44, %v824_v27  ;;  %v858_v52 = vadd.f32 %v852_v26, %v825_v45  ;;  %v1511_v45 = vand.u32 2147483647, %v1507_v29 }
 0x195   : > { %v881_v59 = vpop.permute.xlu1 %880 }
 0x196   : > { %v850_v40 = vpop.permute.xlu0 %849 }
 0x197   : > { %v853_v23 = vsel %vm528_vm6, %v848_v31, %v850_v40  ;;  %1489 = vrot.lane.b32.xlu0 %v1479_v55, %s1845_s13  ;;  %1458 = vrot.lane.b32.xlu1 %v1447_v63, %s1844_s12 }
 0x198   : > { %v859_v58 = vadd.f32 %v853_v23, %v826_v62 }
 0x199   : > { %v967_v18 = vpop.permute.xlu1 %966 }
 0x19a   : > { %v879_v8 = vpop.permute.xlu0 %878 }
 0x19b   : > { %v884_v36 = vsel %vm562_vm7, %v877_v39, %v879_v8  ;;  %v885_v14 = vsel %vm562_vm7, %v879_v8, %v881_v59  ;;  %1518 = vrot.lane.b32.xlu0 %v1510_v22, %s1846_s14  ;;  %1487 = vrot.lane.b32.xlu1 %v1478_v41, %s1845_s13 }
 0x19c   : > { %v890_v50 = vadd.f32 %v884_v36, %v857_v34  ;;  %v891_v28 = vadd.f32 %v885_v14, %v858_v52 }
 0x19d   : > { %v971_v43 = vpop.permute.xlu1 %970 }
 0x19e   : > { %v883_v56 = vpop.permute.xlu0 %882  ;;  %v924_v51 = vadd.f32 %v921_v1, %v890_v50  ;;  %v925_v57 = vadd.f32 %v922_v48, %v891_v28 }
 0x19f   : > { %v886_v60 = vsel %vm562_vm7, %v881_v59, %v883_v56  ;;  %1522 = vrot.lane.b32.xlu0 %v1512_v0, %s1846_s14  ;;  %1491 = vrot.lane.b32.xlu1 %v1480_v17, %s1845_s13 }
 0x1a0   : > { %v892_v37 = vadd.f32 %v886_v60, %v859_v58 }
 0x1a1   : > { %v1000_v27 = vpop.permute.xlu1 %999 }
 0x1a2   : > { %v969_v31 = vpop.permute.xlu0 %968  ;;  %v926_v42 = vadd.f32 %v923_v33, %v892_v37  ;;  %v1758_v33 = vld [vmem:[%s1946_s6 + $0x3] ss:$8 sm:$0x7] }
 0x1a3   : > { %v974_v11 = vsel %vm324_vm0, %v967_v18, %v969_v31  ;;  %v975_v12 = vsel %vm324_vm0, %v969_v31, %v971_v43  ;;  %1520 = vrot.lane.b32.xlu1 %v1511_v45, %s1846_s14  ;;  %v1222_v45 = vrot.slane %v1758_v33, %v2776_v3  ;;  %v1226_v32 = vrot.slane %v1758_v33, %v2777_v24 }
 0x1a4   : > { %v980_v53 = vadd.f32 %v974_v11, %v924_v51  ;;  %v981_v19 = vadd.f32 %v975_v12, %v925_v57  ;;  %v1230_v11 = vrot.slane %v1758_v33, %v1950_v16 }
 0x1a5   : > { %v1004_v2 = vpop.permute.xlu1 %1003 }
 0x1a6   : > { %v973_v62 = vpop.permute.xlu0 %972 }
 0x1a7   : > { %v976_v30 = vsel %vm324_vm0, %v971_v43, %v973_v62  ;;  %1524 = vrot.lane.b32.xlu1 %v1513_v46, %s1846_s14 }
 0x1a8   : > { %v982_v47 = vadd.f32 %v976_v30, %v926_v42 }
 0x1a9   : > { %v1033_v39 = vpop.permute.xlu1 %1032 }
 0x1aa   : > { %v1002_v21 = vpop.permute.xlu0 %1001 }
 0x1ab   : > { %v1007_v49 = vsel %vm358_vm1, %v1000_v27, %v1002_v21  ;;  %v1008_v54 = vsel %vm358_vm1, %v1002_v21, %v1004_v2 }
 0x1ac   : > { %v1013_v4 = vadd.f32 %v1007_v49, %v980_v53  ;;  %v1014_v7 = vadd.f32 %v1008_v54, %v981_v19 }
 0x1ad   : > { %v1037_v44 = vpop.permute.xlu1 %1036 }
 0x1ae   : > { %v1006_v26 = vpop.permute.xlu0 %1005 }
 0x1af   : > { %v1009_v6 = vsel %vm358_vm1, %v1004_v2, %v1006_v26 }
 0x1b0   : > { %v1015_v38 = vadd.f32 %v1009_v6, %v982_v47 }
 0x1b1   : > { %v1066_v55 = vpop.permute.xlu1 %1065 }
 0x1b2   : > { %v1035_v34 = vpop.permute.xlu0 %1034 }
 0x1b3   : > { %v1040_v52 = vsel %vm392_vm2, %v1033_v39, %v1035_v34  ;;  %v1041_v59 = vsel %vm392_vm2, %v1035_v34, %v1037_v44 }
 0x1b4   : > { %v1046_v63 = vadd.f32 %v1040_v52, %v1013_v4  ;;  %v1047_v10 = vadd.f32 %v1041_v59, %v1014_v7 }
 0x1b5   : > { %v1070_v5 = vpop.permute.xlu1 %1069 }
 0x1b6   : > { %v1039_v35 = vpop.permute.xlu0 %1038 }
 0x1b7   : > { %v1042_v15 = vsel %vm392_vm2, %v1037_v44, %v1039_v35 }
 0x1b8   : > { %v1048_v40 = vadd.f32 %v1042_v15, %v1015_v38 }
 0x1ba   : > { %v1068_v23 = vpop.permute.xlu0 %1067 }
 0x1bb   : > { %v1073_v13 = vsel %vm426_vm3, %v1066_v55, %v1068_v23  ;;  %v1074_v20 = vsel %vm426_vm3, %v1068_v23, %v1070_v5 }
 0x1bc   : > { %v1079_v58 = vadd.f32 %v1073_v13, %v1046_v63  ;;  %v1080_v18 = vadd.f32 %v1074_v20, %v1047_v10 }
 0x1be   : > { %v1072_v22 = vpop.permute.xlu0 %1071 }
 0x1bf   : > { %v1075_v41 = vsel %vm426_vm3, %v1070_v5, %v1072_v22 }
 0x1c0   : > { %v1081_v61 = vadd.f32 %v1075_v41, %v1048_v40 }
 0x1c2   : > { %v1099_v25 = vpop.permute.xlu0 %1098 }
 0x1c6   : > { %v1103_v8 = vpop.permute.xlu0 %1102  ;;  %v1237_v9 = vpop.permute.xlu1 %1236 }
 0x1c7   : > { %v1239_v19 = vsub.f32 %v1222_v45, %v1237_v9  ;;  %v1240_v62 = vsub.f32 %v1226_v32, %v1237_v9  ;;  %v1241_v21 = vsub.f32 %v1230_v11, %v1237_v9 }
 0x1c9   : > { %v1242_v44 = vand.u32 2147483647, %v1239_v19  ;;  %v1243_v34 = vand.u32 2147483647, %v1240_v62  ;;  %v1244_v23 = vand.u32 2147483647, %v1241_v21 }
 0x1ca   : > { %v1132_v36 = vpop.permute.xlu0 %1131  ;;  %v1101_v14 = vpop.permute.xlu1 %1100 }
 0x1cb   : > { %v1106_v1 = vsel %vm460_vm4, %v1099_v25, %v1101_v14  ;;  %v1107_v48 = vsel %vm460_vm4, %v1101_v14, %v1103_v8 }
 0x1cc   : > { %v1112_v50 = vadd.f32 %v1106_v1, %v1079_v58  ;;  %v1113_v28 = vadd.f32 %v1107_v48, %v1080_v18 }
 0x1ce   : > { %v1136_v43 = vpop.permute.xlu0 %1135  ;;  %v1105_v0 = vpop.permute.xlu1 %1104 }
 0x1cf   : > { %v1108_v17 = vsel %vm460_vm4, %v1103_v8, %v1105_v0 }
 0x1d0   : > { %v1114_v29 = vadd.f32 %v1108_v17, %v1081_v61 }
 0x1d2   : > { %v1165_v56 = vpop.permute.xlu0 %1164  ;;  %v1134_v51 = vpop.permute.xlu1 %1133 }
 0x1d3   : > { %v1139_v31 = vsel %vm494_vm5, %v1132_v36, %v1134_v51  ;;  %v1140_v42 = vsel %vm494_vm5, %v1134_v51, %v1136_v43 }
 0x1d4   : > { %v1145_v30 = vadd.f32 %v1139_v31, %v1112_v50  ;;  %v1146_v47 = vadd.f32 %v1140_v42, %v1113_v28 }
 0x1d6   : > { %v1169_v57 = vpop.permute.xlu0 %1168  ;;  %v1138_v60 = vpop.permute.xlu1 %1137 }
 0x1d7   : > { %v1141_v39 = vsel %vm494_vm5, %v1136_v43, %v1138_v60 }
 0x1d8   : > { %v1147_v52 = vadd.f32 %v1141_v39, %v1114_v29 }
 0x1da   : > { %v1198_v37 = vpop.permute.xlu0 %1197  ;;  %v1167_v27 = vpop.permute.xlu1 %1166 }
 0x1db   : > { %v1172_v2 = vsel %vm528_vm6, %v1165_v56, %v1167_v27  ;;  %v1173_v46 = vsel %vm528_vm6, %v1167_v27, %v1169_v57 }
 0x1dc   : > { %v1178_v49 = vadd.f32 %v1172_v2, %v1145_v30  ;;  %v1179_v54 = vadd.f32 %v1173_v46, %v1146_v47 }
 0x1de   : > { %v1202_v12 = vpop.permute.xlu0 %1201  ;;  %v1171_v53 = vpop.permute.xlu1 %1170 }
 0x1df   : > { %v1174_v26 = vsel %vm528_vm6, %v1169_v57, %v1171_v53 }
 0x1e0   : > { %v1180_v63 = vadd.f32 %v1174_v26, %v1147_v52 }
 0x1e2   : > { %v1288_v4 = vpop.permute.xlu0 %1287  ;;  %v1200_v7 = vpop.permute.xlu1 %1199 }
 0x1e3   : > { %v1205_v6 = vsel %vm562_vm7, %v1198_v37, %v1200_v7  ;;  %v1206_v38 = vsel %vm562_vm7, %v1200_v7, %v1202_v12 }
 0x1e4   : > { %v1211_v59 = vadd.f32 %v1205_v6, %v1178_v49  ;;  %v1212_v55 = vadd.f32 %v1206_v38, %v1179_v54 }
 0x1e6   : > { %v1292_v10 = vpop.permute.xlu0 %1291  ;;  %v1204_v35 = vpop.permute.xlu1 %1203  ;;  %v1245_v15 = vadd.f32 %v1242_v44, %v1211_v59  ;;  %v1246_v40 = vadd.f32 %v1243_v34, %v1212_v55 }
 0x1e7   : > { %v1207_v5 = vsel %vm562_vm7, %v1202_v12, %v1204_v35 }
 0x1e8   : > { %v1213_v13 = vadd.f32 %v1207_v5, %v1180_v63 }
 0x1ea   : > { %v1321_v20 = vpop.permute.xlu0 %1320  ;;  %v1290_v58 = vpop.permute.xlu1 %1289  ;;  %v1247_v18 = vadd.f32 %v1244_v23, %v1213_v13 }
 0x1eb   : > { %v1295_v33 = vsel %vm324_vm0, %v1288_v4, %v1290_v58  ;;  %v1296_v37 = vsel %vm324_vm0, %v1290_v58, %v1292_v10 }
 0x1ec   : > { %v1301_v32 = vadd.f32 %v1295_v33, %v1245_v15  ;;  %v1302_v31 = vadd.f32 %v1296_v37, %v1246_v40 }
 0x1ee   : > { %v1325_v22 = vpop.permute.xlu0 %1324  ;;  %v1294_v41 = vpop.permute.xlu1 %1293 }
 0x1ef   : > { %v1297_v12 = vsel %vm324_vm0, %v1292_v10, %v1294_v41 }
 0x1f0   : > { %v1303_v39 = vadd.f32 %v1297_v12, %v1247_v18 }
 0x1f2   : > { %v1354_v61 = vpop.permute.xlu0 %1353  ;;  %v1323_v25 = vpop.permute.xlu1 %1322 }
 0x1f3   : > { %v1328_v27 = vsel %vm358_vm1, %v1321_v20, %v1323_v25  ;;  %v1329_v45 = vsel %vm358_vm1, %v1323_v25, %v1325_v22 }
 0x1f4   : > { %v1334_v2 = vadd.f32 %v1328_v27, %v1301_v32  ;;  %v1335_v46 = vadd.f32 %v1329_v45, %v1302_v31  ;;  %v1538_v27 = vld [vmem:[%s1946_s6 + $0x18] sm:$0xff]  ;;  %v1537_v45 = vld [vmem:[%s1946_s6 + $0x10] sm:$0xff] }
 0x1f6   : > { %v1358_v8 = vpop.permute.xlu0 %1357  ;;  %v1327_v9 = vpop.permute.xlu1 %1326 }
 0x1f7   : > { %v1330_v62 = vsel %vm358_vm1, %v1325_v22, %v1327_v9 }
 0x1f8   : > { %v1336_v26 = vadd.f32 %v1330_v62, %v1303_v39 }
 0x1fa   : > { %v1387_v36 = vpop.permute.xlu0 %1386  ;;  %v1356_v14 = vpop.permute.xlu1 %1355 }
 0x1fb   : > { %v1361_v53 = vsel %vm392_vm2, %v1354_v61, %v1356_v14  ;;  %v1362_v19 = vsel %vm392_vm2, %v1356_v14, %v1358_v8 }
 0x1fc   : > { %v1367_v21 = vadd.f32 %v1361_v53, %v1334_v2  ;;  %v1368_v49 = vadd.f32 %v1362_v19, %v1335_v46  ;;  %v1583_v53 = vld [vmem:[%s2744_s2] sm:$0x7] }
 0x1fd   : > { %v1588_v46 = vrot.slane %v1583_v53, %v2776_v3  ;;  %v1592_v62 = vrot.slane %v1583_v53, %v2777_v24  ;;  %v1596_v39 = vrot.slane %v1583_v53, %v1950_v16 }
 0x1fe   : > { %v1391_v1 = vpop.permute.xlu0 %1390  ;;  %v1360_v48 = vpop.permute.xlu1 %1359 }
 0x1ff   : > { %v1363_v4 = vsel %vm392_vm2, %v1358_v8, %v1360_v48 }
 0x200   : > { %v1369_v63 = vadd.f32 %v1363_v4, %v1336_v26 }
 0x202   : > { %v1420_v50 = vpop.permute.xlu0 %1419  ;;  %v1389_v28 = vpop.permute.xlu1 %1388 }
 0x203   : > { %v1394_v30 = vsel %vm426_vm3, %v1387_v36, %v1389_v28  ;;  %v1395_v47 = vsel %vm426_vm3, %v1389_v28, %v1391_v1 }
 0x204   : > { %v1400_v6 = vadd.f32 %v1394_v30, %v1367_v21  ;;  %v1401_v38 = vadd.f32 %v1395_v47, %v1368_v49 }
 0x206   : > { %v1424_v43 = vpop.permute.xlu0 %1423  ;;  %v1393_v0 = vpop.permute.xlu1 %1392 }
 0x207   : > { %v1396_v52 = vsel %vm426_vm3, %v1391_v1, %v1393_v0 }
 0x208   : > { %v1402_v13 = vadd.f32 %v1396_v52, %v1369_v63 }
 0x20a   : > { %v1453_v17 = vpop.permute.xlu0 %1452  ;;  %v1422_v29 = vpop.permute.xlu1 %1421 }
 0x20b   : > { %v1427_v7 = vsel %vm460_vm4, %v1420_v50, %v1422_v29  ;;  %v1428_v44 = vsel %vm460_vm4, %v1422_v29, %v1424_v43  ;;  %v1535_v29 = vld [vmem:[%s1946_s6] sm:$0xff] }
 0x20c   : > { %v1433_v10 = vadd.f32 %v1427_v7, %v1400_v6  ;;  %v1434_v35 = vadd.f32 %v1428_v44, %v1401_v38 }
 0x20e   : > { %v1457_v56 = vpop.permute.xlu0 %1456  ;;  %v1426_v51 = vpop.permute.xlu1 %1425 }
 0x20f   : > { %v1429_v40 = vsel %vm460_vm4, %v1424_v43, %v1426_v51 }
 0x210   : > { %v1435_v22 = vadd.f32 %v1429_v40, %v1402_v13 }
 0x212   : > { %v1486_v57 = vpop.permute.xlu0 %1485  ;;  %v1455_v60 = vpop.permute.xlu1 %1454 }
 0x213   : > { %v1460_v59 = vsel %vm494_vm5, %v1453_v17, %v1455_v60  ;;  %v1461_v55 = vsel %vm494_vm5, %v1455_v60, %v1457_v56 }
 0x214   : > { %v1466_v20 = vadd.f32 %v1460_v59, %v1433_v10  ;;  %v1467_v58 = vadd.f32 %v1461_v55, %v1434_v35 }
 0x216   : > { %v1490_v42 = vpop.permute.xlu0 %1489  ;;  %v1459_v11 = vpop.permute.xlu1 %1458 }
 0x217   : > { %v1462_v18 = vsel %vm494_vm5, %v1457_v56, %v1459_v11  ;;  %v1536_v56 = vld [vmem:[%s1946_s6 + $0x8] sm:$0xff] }
 0x218   : > { %v1468_v1 = vadd.f32 %v1462_v18, %v1435_v22 }
 0x21a   : > { %v1488_v54 = vpop.permute.xlu1 %1487  ;;  %v1519_v34 = vpop.permute.xlu0 %1518 }
 0x21b   : > { %v1493_v5 = vsel %vm528_vm6, %v1486_v57, %v1488_v54  ;;  %v1494_v23 = vsel %vm528_vm6, %v1488_v54, %v1490_v42 }
 0x21c   : > { %v1499_v41 = vadd.f32 %v1493_v5, %v1466_v20  ;;  %v1500_v61 = vadd.f32 %v1494_v23, %v1467_v58 }
 0x21e   : > { %v1492_v15 = vpop.permute.xlu1 %1491  ;;  %v1523_v25 = vpop.permute.xlu0 %1522 }
 0x21f   : > { %v1495_v9 = vsel %vm528_vm6, %v1490_v42, %v1492_v15 }
 0x220   : > { %v1501_v28 = vadd.f32 %v1495_v9, %v1468_v1 }
 0x222   : > { %v1521_v8 = vpop.permute.xlu1 %1520 }
 0x223   : > { %v1526_v36 = vsel %vm562_vm7, %v1519_v34, %v1521_v8  ;;  %v1527_v14 = vsel %vm562_vm7, %v1521_v8, %v1523_v25 }
 0x224   : > { %v1532_v48 = vadd.f32 %v1526_v36, %v1499_v41  ;;  %v1533_v50 = vadd.f32 %v1527_v14, %v1500_v61 }
 0x226   : > { %v1525_v43 = vpop.permute.xlu1 %1524  ;;  %1544 = vrot.lane.b32.xlu1 %v1533_v50, %s1847_s15  ;;  %1542 = vrot.lane.b32.xlu0 %v1532_v48, %s1847_s15 }
 0x227   : > { %v1528_v0 = vsel %vm562_vm7, %v1523_v25, %v1525_v43 }
 0x228   : > { %v1534_v17 = vadd.f32 %v1528_v0, %v1501_v28 }
 0x22a   : > { %1546 = vrot.lane.b32.xlu0 %v1534_v17, %s1847_s15 }
 0x298   : > { %v1545_v51 = vpop.permute.xlu1 %1544  ;;  %v1543_v57 = vpop.permute.xlu0 %1542 }
 0x299   : > { %v1549_v60 = vsel %vm1548_vm8, %v1543_v57, %v1545_v51  ;;  %v1555_v33 = vsub.f32 %v1535_v29, %v1543_v57 }
 0x29a   : > { %v1556_v37 = vsub.f32 %v1536_v56, %v1549_v60 }
 0x29b   : > { %1563 = vrot.lane.b32.xlu1 %v1555_v33, %s1842_s10 }
 0x29c   : > { %1565 = vrot.lane.b32.xlu0 %v1556_v37, %s1842_s10  ;;  %v1547_v32 = vpop.permute.xlu0 %1546 }
 0x29d   : > { %v1550_v31 = vsel %vm1548_vm8, %v1545_v51, %v1547_v32  ;;  %v1558_v42 = vsub.f32 %v1538_v27, %v1547_v32 }
 0x29e   : > { %v1557_v11 = vsub.f32 %v1537_v45, %v1550_v31 }
 0x2a0   : > { %1569 = vrot.lane.b32.xlu0 %v1558_v42, %s1842_s10  ;;  %1567 = vrot.lane.b32.xlu1 %v1557_v11, %s1842_s10 }
 0x30d   : > { %v1564_v12 = vpop.permute.xlu1 %1563 }
 0x30e   : > { %v1566_v19 = vpop.permute.xlu0 %1565 }
 0x30f   : > { %v1571_v2 = vsel %vm426_vm3, %v1564_v12, %v1566_v19 }
 0x310   : > { %1577 = vst [vmem:[%s237_s21] sm:$0xff] %v1571_v2  ;;  %v1600_v54 = vmul.f32 %v1588_v46, %v1571_v2 }
 0x312   : > { %v1568_v30 = vpop.permute.xlu1 %1567  ;;  %v1570_v47 = vpop.permute.xlu0 %1569 }
 0x313   : > { %v1572_v21 = vsel %vm426_vm3, %v1566_v19, %v1568_v30  ;;  %v1573_v49 = vsel %vm426_vm3, %v1568_v30, %v1570_v47 }
 0x314   : > { %1578 = vst [vmem:[%s237_s21 + $0x8] sm:$0xff] %v1572_v21  ;;  %1579 = vst [vmem:[%s237_s21 + $0x10] sm:$0xff] %v1573_v49  ;;  %v1601_v4 = vmul.f32 %v1592_v62, %v1572_v21  ;;  %v1602_v7 = vmul.f32 %v1596_v39, %v1573_v49 }
 0x316   : > { %v1603_v44 = vadd.f32 %v1601_v4, %v1600_v54 }
 0x318   : > { %v1604_v26 = vadd.f32 %v1603_v44, %v1602_v7 }
 0x31a   : > { %1605 = vadd.xlane.f32.xlu1 %v1604_v26 }
 0x3a7   : > { %v1606_v3 = vpop.xlane.xlu1 %1605 }
 0x3a8   : > { %v1607_v16 = vmul.f32 0.00390625, %v1606_v3 }
 0x3aa   : > { %v1608_v24 = vsub.f32 %v1571_v2, %v1607_v16  ;;  %v1609_v6 = vsub.f32 %v1572_v21, %v1607_v16  ;;  %v1610_v38 = vsub.f32 %v1573_v49, %v1607_v16  ;;  %1615 = vst.msk [vmem:[%s241_s27] sm:$0xff] %vm1614_vm9, %v1607_v16 }
 0x3ac   : > { %v1611_v34 = vmul.f32 %v1608_v24, %v1588_v46  ;;  %v1612_v52 = vmul.f32 %v1609_v6, %v1592_v62  ;;  %v1613_v59 = vmul.f32 %v1610_v38, %v1596_v39 }
 0x3ae   : > { %v1616_v55 = vmul.f32 %v1611_v34, %v1611_v34  ;;  %v1617_v63 = vmul.f32 %v1612_v52, %v1612_v52  ;;  %v1618_v10 = vmul.f32 %v1613_v59, %v1613_v59 }
 0x3b0   : > { %v1619_v35 = vadd.f32 %v1617_v63, %v1616_v55 }
 0x3b2   : > { %v1620_v15 = vadd.f32 %v1619_v35, %v1618_v10 }
 0x3b4   : > { %1621 = vadd.xlane.f32.xlu0 %v1620_v15 }
 0x441   : > { %v1622_v40 = vpop.xlane.xlu0 %1621 }
 0x442   : > { %1623 = vst.msk [vmem:[%s245_s29] sm:$0xff] %vm1614_vm9, %v1622_v40 }
 0x443 PF: > { %s16_s18 = sadd.s32 1, %s1828_s18  }
 0x444   : > { %p13_p4 = scmp.ge.s32.totalorder %s16_s18, 4  }
 0x446   :  { %15 = sbr.rel (!%p13_p4) target bundleno = 1 (0x1), region = 95 }

</bundles_post_ra>
